<compile_context>
chip_gen: v7x
topology: tpu7x:2x2x1
jax: 0.10.0
libtpu: 0.0.40
codegen_flags: <defaults>
</compile_context>

<pallas_src>
import functools

import jax
import jax.numpy as jnp
from jax.experimental import pallas as pl

# ----------------------------- mini-BERT config ------------------------------
VOCAB = 100
MAX_POS = 16
TYPE_VOCAB = 2
HIDDEN = 32
NUM_HEADS = 4
HEAD_DIM = HIDDEN // NUM_HEADS
INTER = 64
NUM_LAYERS = 2
EMBED_DIM = 16          # TextEncoder embedding_dim (512 in the original module)
LN_EPS = 1e-12          # BERT LayerNorm eps


# ------------------------------- fused kernel --------------------------------
def _layer_norm(x, g, b):
    mu = jnp.mean(x, axis=-1, keepdims=True)
    var = jnp.mean((x - mu) ** 2, axis=-1, keepdims=True)
    return (x - mu) * jax.lax.rsqrt(var + LN_EPS) * g + b


def _text_encoder_kernel(emb_ref, mask_ref, emb_ln_ref, attn_w_ref, ffn_w_ref,
                         vec_ref, fc_ref, out_ref, *, batch, seq):
    B, S = batch, seq
    H3 = 3 * HIDDEN
    bf16 = jnp.bfloat16

    # --- additive attention bias, built once, head-batched (n = head*B + b) ---
    bias = (1.0 - mask_ref[...]) * (-1e9)                       # (B, 1, S) f32
    bias = jnp.concatenate([bias] * NUM_HEADS, axis=0)          # (NUM_HEADS*B, 1, S)

    # --- embeddings LayerNorm (emb dropout = identity at inference) ---
    h = _layer_norm(emb_ref[...], emb_ln_ref[0:1, :], emb_ln_ref[1:2, :])   # (B*S, H) f32

    for l in range(NUM_LAYERS):                                 # static unroll
        # ---------------- fused QKV projection (scale folded into Wq/bq) -----
        wqkv = attn_w_ref[l, :, 0:H3]                           # (H, 3H) bf16
        wo = attn_w_ref[l, :, H3:H3 + HIDDEN]                   # (H, H)  bf16
        qkv = jnp.dot(h.astype(bf16), wqkv,
                      preferred_element_type=jnp.float32) + vec_ref[l, 0:1, :]   # (B*S, 3H)

        # ------------- head-batched relayout: (NUM_HEADS*B, S, HEAD_DIM) -----
        def split_heads(base):
            parts = [qkv[:, base + i * HEAD_DIM: base + (i + 1) * HEAD_DIM]
                     .reshape(B, S, HEAD_DIM) for i in range(NUM_HEADS)]
            return jnp.concatenate(parts, axis=0)               # leading-dim concat

        qh = split_heads(0)
        kh = split_heads(HIDDEN)
        vh = split_heads(2 * HIDDEN)

        # ---------------- batched scores / softmax / context -----------------
        s = jnp.einsum('nqd,nkd->nqk', qh.astype(bf16), kh.astype(bf16),
                       preferred_element_type=jnp.float32) + bias   # (H*B, S, S)
        s = s - jnp.max(s, axis=-1, keepdims=True)
        p = jnp.exp(s)
        p = p * pl.reciprocal(jnp.sum(p, axis=-1, keepdims=True), approx=True)
        # attention-prob dropout: identity at inference
        ctx = jnp.einsum('nqk,nkd->nqd', p.astype(bf16), vh.astype(bf16),
                         preferred_element_type=jnp.float32)        # (H*B, S, hd)

        # merge heads back to lanes and hit Wo once (single K=32 matmul)
        ctx = ctx.reshape(NUM_HEADS, B * S, HEAD_DIM)
        ctx = jnp.concatenate([ctx[i] for i in range(NUM_HEADS)], axis=-1)  # (B*S, H)
        attn = jnp.dot(ctx.astype(bf16), wo,
                       preferred_element_type=jnp.float32) + vec_ref[l, 2:3, 0:HIDDEN]

        # fused add + LayerNorm epilogue (post-LN, BERT style)
        h = _layer_norm(attn + h, vec_ref[l, 3:4, 0:HIDDEN], vec_ref[l, 4:5, 0:HIDDEN])

        # ------------------------------ feed-forward -------------------------
        w1 = ffn_w_ref[l, 0:HIDDEN, :]                           # (H, INTER) bf16
        w2 = ffn_w_ref[l, HIDDEN:HIDDEN + INTER, 0:HIDDEN]       # (INTER, H) bf16
        f = jnp.dot(h.astype(bf16), w1,
                    preferred_element_type=jnp.float32) + vec_ref[l, 1:2, 0:INTER]
        # TODO(synk): BERT uses the exact (erf) GELU; tanh approximation used here.
        f = jax.nn.gelu(f, approximate=True)
        f = jnp.dot(f.astype(bf16), w2,
                    preferred_element_type=jnp.float32) + vec_ref[l, 5:6, 0:HIDDEN]
        h = _layer_norm(f + h, vec_ref[l, 6:7, 0:HIDDEN], vec_ref[l, 7:8, 0:HIDDEN])

    # --- fc projection on the whole slab; CLS rows sliced outside the kernel ---
    # (dropout before fc: identity at inference)
    out_ref[...] = (jnp.dot(h.astype(bf16), fc_ref[0:HIDDEN, :].astype(bf16),
                            preferred_element_type=jnp.float32)
                    + fc_ref[HIDDEN:HIDDEN + 1, :])              # (B*S, EMBED_DIM)


# --------------------------- parameter construction ---------------------------
def init_params(key):
    def nrm(k, shape, scale=0.02):
        return (scale * jax.random.normal(k, shape)).astype(jnp.float32)

    ks = iter(jax.random.split(key, 20))
    L, H, I = NUM_LAYERS, HIDDEN, INTER
    inv_sqrt_hd = 1.0 / (HEAD_DIM ** 0.5)

    wq = nrm(next(ks), (L, H, H)); bq = nrm(next(ks), (L, 1, H))
    wk = nrm(next(ks), (L, H, H)); bk = nrm(next(ks), (L, 1, H))
    wv = nrm(next(ks), (L, H, H)); bv = nrm(next(ks), (L, 1, H))
    wo = nrm(next(ks), (L, H, H)); bo = nrm(next(ks), (L, 1, H))
    w1 = nrm(next(ks), (L, H, I)); b1 = nrm(next(ks), (L, 1, I))
    w2 = nrm(next(ks), (L, I, H)); b2 = nrm(next(ks), (L, 1, H))
    fc_w = nrm(next(ks), (H, EMBED_DIM)); fc_b = nrm(next(ks), (1, EMBED_DIM))

    # fold the 1/sqrt(head_dim) attention scale into the query projection
    wq = wq * inv_sqrt_hd
    bq = bq * inv_sqrt_hd

    # packed attention weights [Wq | Wk | Wv | Wo] -> (L, H, 4H), bf16 MXU operands
    attn_w = jnp.concatenate([wq, wk, wv, wo], axis=-1).astype(jnp.bfloat16)

    # packed FFN weights: rows 0:H = W1 (H,I); rows H:H+I = W2 lane-padded to I
    w2_pad = jnp.pad(w2, ((0, 0), (0, 0), (0, I - H)))
    ffn_w = jnp.concatenate([w1, w2_pad], axis=1).astype(jnp.bfloat16)   # (L, H+I, I)

    # packed per-layer biases / LayerNorm params, lane-padded to 3H:
    # row 0: bqkv | 1: b1 | 2: bo | 3: ln1_g | 4: ln1_b | 5: b2 | 6: ln2_g | 7: ln2_b
    def pad3h(x):
        return jnp.pad(x, ((0, 0), (0, 0), (0, 3 * H - x.shape[-1])))
    ones = jnp.ones((L, 1, H), jnp.float32)
    zeros = jnp.zeros((L, 1, H), jnp.float32)
    layer_vec = jnp.concatenate([
        jnp.concatenate([bq, bk, bv], axis=-1),   # (L, 1, 3H)
        pad3h(b1), pad3h(bo), pad3h(ones), pad3h(zeros),
        pad3h(b2), pad3h(ones), pad3h(zeros),
    ], axis=1)                                    # (L, 8, 3H) f32

    return {
        "word_emb": nrm(next(ks), (VOCAB, H)),
        "pos_emb": nrm(next(ks), (MAX_POS, H)),
        "type_emb": nrm(next(ks), (TYPE_VOCAB, H)),
        "emb_ln": jnp.concatenate([jnp.ones((1, H), jnp.float32),
                                   jnp.zeros((1, H), jnp.float32)], axis=0),  # (2, H)
        "attn_w": attn_w,
        "ffn_w": ffn_w,
        "layer_vec": layer_vec,
        "fc": jnp.concatenate([fc_w, fc_b], axis=0),   # (H+1, EMBED_DIM) f32
    }


# -------------------------------- forward pass --------------------------------
@jax.jit
def text_encoder_forward(params, input_ids, attention_mask):
    B, S = input_ids.shape
    mask = attention_mask.astype(jnp.float32)[:, None, :]          # (B, 1, S)

    # embedding gathers stay in glue JAX (token_type_ids = 0)
    we = jnp.take(params["word_emb"], input_ids, axis=0)           # (B, S, H)
    pe = params["pos_emb"][:S][None, :, :]
    te = params["type_emb"][0][None, None, :]
    emb = (we + pe + te).reshape(B * S, HIDDEN).astype(jnp.float32)

    kernel = functools.partial(_text_encoder_kernel, batch=B, seq=S)
    out_full = pl.pallas_call(
        kernel,
        out_shape=jax.ShapeDtypeStruct((B * S, EMBED_DIM), jnp.float32),
    )(emb, mask, params["emb_ln"], params["attn_w"], params["ffn_w"],
      params["layer_vec"], params["fc"])

    # CLS token (row b*S) selected on the tiny kernel output
    return out_full.reshape(B, S, EMBED_DIM)[:, 0, :]


# ------------------------------------ main ------------------------------------
if __name__ == "__main__":
    key = jax.random.PRNGKey(0)
    k_param, k_ids = jax.random.split(key)

    params = init_params(k_param)

    B, S = 2, 8
    input_ids = jax.random.randint(k_ids, (B, S), 0, VOCAB, dtype=jnp.int32)
    attention_mask = jnp.array([[1, 1, 1, 1, 1, 1, 1, 1],
                                [1, 1, 1, 1, 1, 1, 0, 0]], dtype=jnp.int32)

    out = text_encoder_forward(params, input_ids, attention_mask)
    out = jax.block_until_ready(out)
    assert out.shape == (B, EMBED_DIM) and out.dtype == jnp.float32
    assert bool(jnp.all(jnp.isfinite(out)))
    print("KERNEL_OK")
</pallas_src>

<mosaic_0001>
module attributes {stable_mosaic.version = 11 : i64} {
  func.func @_text_encoder_kernel(%arg0: memref<16x32xf32, #tpu.memory_space<vmem>>, %arg1: memref<2x1x8xf32, #tpu.memory_space<vmem>>, %arg2: memref<2x32xf32, #tpu.memory_space<vmem>>, %arg3: memref<2x32x128xbf16, #tpu.memory_space<vmem>>, %arg4: memref<2x96x64xbf16, #tpu.memory_space<vmem>>, %arg5: memref<2x8x96xf32, #tpu.memory_space<vmem>>, %arg6: memref<33x16xf32, #tpu.memory_space<vmem>>, %arg7: memref<16x16xf32, #tpu.memory_space<vmem>>) attributes {dimension_semantics = [], scalar_prefetch = 0 : i64, scratch_operands = 0 : i64, tpu.core_type = #tpu.core_type<tc>} {
    %c0 = arith.constant 0 : index
    %c0_0 = arith.constant 0 : index
    %c0_1 = arith.constant 0 : index
    %0 = vector.load %arg1[%c0, %c0_0, %c0_1] : memref<2x1x8xf32, #tpu.memory_space<vmem>>, vector<2x1x8xf32>
    %cst = arith.constant 1.000000e+00 : f32
    %1 = vector.broadcast %cst : f32 to vector<2x1x8xf32>
    %2 = arith.subf %1, %0 : vector<2x1x8xf32>
    %cst_2 = arith.constant -1.000000e+09 : f32
    %3 = vector.broadcast %cst_2 : f32 to vector<2x1x8xf32>
    %4 = arith.mulf %2, %3 : vector<2x1x8xf32>
    %5 = tpu.concatenate %4, %4, %4, %4 in 0 : vector<2x1x8xf32>, vector<2x1x8xf32>, vector<2x1x8xf32>, vector<2x1x8xf32> -> vector<8x1x8xf32>
    %c0_3 = arith.constant 0 : index
    %c0_4 = arith.constant 0 : index
    %6 = vector.load %arg0[%c0_3, %c0_4] : memref<16x32xf32, #tpu.memory_space<vmem>>, vector<16x32xf32>
    %c0_5 = arith.constant 0 : index
    %c0_6 = arith.constant 0 : index
    %7 = vector.load %arg2[%c0_5, %c0_6] : memref<2x32xf32, #tpu.memory_space<vmem>>, vector<1x32xf32>
    %c1 = arith.constant 1 : index
    %c0_7 = arith.constant 0 : index
    %8 = vector.load %arg2[%c1, %c0_7] : memref<2x32xf32, #tpu.memory_space<vmem>>, vector<1x32xf32>
    %cst_8 = arith.constant dense<0.000000e+00> : vector<16xf32>
    %9 = vector.multi_reduction <add>, %6, %cst_8 [1] : vector<16x32xf32> to vector<16xf32>
    %10 = vector.shape_cast %9 : vector<16xf32> to vector<16x1xf32>
    %cst_9 = arith.constant 3.200000e+01 : f32
    %11 = vector.broadcast %cst_9 : f32 to vector<16x1xf32>
    %12 = arith.divf %10, %11 : vector<16x1xf32>
    %13 = vector.broadcast %12 : vector<16x1xf32> to vector<16x32xf32>
    %14 = arith.subf %6, %13 : vector<16x32xf32>
    %15 = arith.mulf %14, %14 : vector<16x32xf32>
    %cst_10 = arith.constant dense<0.000000e+00> : vector<16xf32>
    %16 = vector.multi_reduction <add>, %15, %cst_10 [1] : vector<16x32xf32> to vector<16xf32>
    %17 = vector.shape_cast %16 : vector<16xf32> to vector<16x1xf32>
    %cst_11 = arith.constant 3.200000e+01 : f32
    %18 = vector.broadcast %cst_11 : f32 to vector<16x1xf32>
    %19 = arith.divf %17, %18 : vector<16x1xf32>
    %20 = vector.broadcast %12 : vector<16x1xf32> to vector<16x32xf32>
    %21 = arith.subf %6, %20 : vector<16x32xf32>
    %cst_12 = arith.constant 9.99999996E-13 : f32
    %22 = vector.broadcast %cst_12 : f32 to vector<16x1xf32>
    %23 = arith.addf %19, %22 : vector<16x1xf32>
    %24 = math.rsqrt %23 : vector<16x1xf32>
    %25 = vector.broadcast %24 : vector<16x1xf32> to vector<16x32xf32>
    %26 = arith.mulf %21, %25 : vector<16x32xf32>
    %27 = vector.broadcast %7 : vector<1x32xf32> to vector<16x32xf32>
    %28 = arith.mulf %26, %27 : vector<16x32xf32>
    %29 = vector.broadcast %8 : vector<1x32xf32> to vector<16x32xf32>
    %30 = arith.addf %28, %29 : vector<16x32xf32>
    %c0_13 = arith.constant 0 : index
    %c0_14 = arith.constant 0 : index
    %c0_15 = arith.constant 0 : index
    %31 = vector.load %arg3[%c0_13, %c0_14, %c0_15] : memref<2x32x128xbf16, #tpu.memory_space<vmem>>, vector<1x32x96xbf16>
    %32 = vector.shape_cast %31 : vector<1x32x96xbf16> to vector<32x96xbf16>
    %c0_16 = arith.constant 0 : index
    %c0_17 = arith.constant 0 : index
    %c96 = arith.constant 96 : index
    %33 = vector.load %arg3[%c0_16, %c0_17, %c96] : memref<2x32x128xbf16, #tpu.memory_space<vmem>>, vector<1x32x32xbf16>
    %34 = vector.shape_cast %33 : vector<1x32x32xbf16> to vector<32x32xbf16>
    %35 = arith.truncf %30 : vector<16x32xf32> to vector<16x32xbf16>
    %cst_18 = arith.constant dense<0.000000e+00> : vector<16x96xf32>
    %36 = tpu.matmul %35, %32, %cst_18 {dimension_numbers = #tpu.dot_dimension_numbers<[1], [0], [0], [1], [0, 0, 1, 1], [], []>} : vector<16x32xbf16>, vector<32x96xbf16>, vector<16x96xf32> -> vector<16x96xf32>
    %c0_19 = arith.constant 0 : index
    %c0_20 = arith.constant 0 : index
    %c0_21 = arith.constant 0 : index
    %37 = vector.load %arg5[%c0_19, %c0_20, %c0_21] : memref<2x8x96xf32, #tpu.memory_space<vmem>>, vector<1x1x96xf32>
    %38 = vector.shape_cast %37 : vector<1x1x96xf32> to vector<1x96xf32>
    %39 = vector.broadcast %38 : vector<1x96xf32> to vector<16x96xf32>
    %40 = arith.addf %36, %39 : vector<16x96xf32>
    %41 = vector.extract_strided_slice %40 {offsets = [0, 0], sizes = [16, 8], strides = [1, 1]} : vector<16x96xf32> to vector<16x8xf32>
    %42 = vector.shape_cast %41 : vector<16x8xf32> to vector<2x8x8xf32>
    %43 = vector.extract_strided_slice %40 {offsets = [0, 8], sizes = [16, 8], strides = [1, 1]} : vector<16x96xf32> to vector<16x8xf32>
    %44 = vector.shape_cast %43 : vector<16x8xf32> to vector<2x8x8xf32>
    %45 = vector.extract_strided_slice %40 {offsets = [0, 16], sizes = [16, 8], strides = [1, 1]} : vector<16x96xf32> to vector<16x8xf32>
    %46 = vector.shape_cast %45 : vector<16x8xf32> to vector<2x8x8xf32>
    %47 = vector.extract_strided_slice %40 {offsets = [0, 24], sizes = [16, 8], strides = [1, 1]} : vector<16x96xf32> to vector<16x8xf32>
    %48 = vector.shape_cast %47 : vector<16x8xf32> to vector<2x8x8xf32>
    %49 = tpu.concatenate %42, %44, %46, %48 in 0 : vector<2x8x8xf32>, vector<2x8x8xf32>, vector<2x8x8xf32>, vector<2x8x8xf32> -> vector<8x8x8xf32>
    %50 = vector.extract_strided_slice %40 {offsets = [0, 32], sizes = [16, 8], strides = [1, 1]} : vector<16x96xf32> to vector<16x8xf32>
    %51 = vector.shape_cast %50 : vector<16x8xf32> to vector<2x8x8xf32>
    %52 = vector.extract_strided_slice %40 {offsets = [0, 40], sizes = [16, 8], strides = [1, 1]} : vector<16x96xf32> to vector<16x8xf32>
    %53 = vector.shape_cast %52 : vector<16x8xf32> to vector<2x8x8xf32>
    %54 = vector.extract_strided_slice %40 {offsets = [0, 48], sizes = [16, 8], strides = [1, 1]} : vector<16x96xf32> to vector<16x8xf32>
    %55 = vector.shape_cast %54 : vector<16x8xf32> to vector<2x8x8xf32>
    %56 = vector.extract_strided_slice %40 {offsets = [0, 56], sizes = [16, 8], strides = [1, 1]} : vector<16x96xf32> to vector<16x8xf32>
    %57 = vector.shape_cast %56 : vector<16x8xf32> to vector<2x8x8xf32>
    %58 = tpu.concatenate %51, %53, %55, %57 in 0 : vector<2x8x8xf32>, vector<2x8x8xf32>, vector<2x8x8xf32>, vector<2x8x8xf32> -> vector<8x8x8xf32>
    %59 = vector.extract_strided_slice %40 {offsets = [0, 64], sizes = [16, 8], strides = [1, 1]} : vector<16x96xf32> to vector<16x8xf32>
    %60 = vector.shape_cast %59 : vector<16x8xf32> to vector<2x8x8xf32>
    %61 = vector.extract_strided_slice %40 {offsets = [0, 72], sizes = [16, 8], strides = [1, 1]} : vector<16x96xf32> to vector<16x8xf32>
    %62 = vector.shape_cast %61 : vector<16x8xf32> to vector<2x8x8xf32>
    %63 = vector.extract_strided_slice %40 {offsets = [0, 80], sizes = [16, 8], strides = [1, 1]} : vector<16x96xf32> to vector<16x8xf32>
    %64 = vector.shape_cast %63 : vector<16x8xf32> to vector<2x8x8xf32>
    %65 = vector.extract_strided_slice %40 {offsets = [0, 88], sizes = [16, 8], strides = [1, 1]} : vector<16x96xf32> to vector<16x8xf32>
    %66 = vector.shape_cast %65 : vector<16x8xf32> to vector<2x8x8xf32>
    %67 = tpu.concatenate %60, %62, %64, %66 in 0 : vector<2x8x8xf32>, vector<2x8x8xf32>, vector<2x8x8xf32>, vector<2x8x8xf32> -> vector<8x8x8xf32>
    %68 = arith.truncf %49 : vector<8x8x8xf32> to vector<8x8x8xbf16>
    %69 = arith.truncf %58 : vector<8x8x8xf32> to vector<8x8x8xbf16>
    "tpu.trace_start"() <{level = 10 : i32, message = "nqd,nkd->nqk"}> : () -> ()
    %cst_22 = arith.constant dense<0.000000e+00> : vector<8x8x8xf32>
    %70 = tpu.matmul %68, %69, %cst_22 {dimension_numbers = #tpu.dot_dimension_numbers<[2], [2], [1], [1], [0, 0, 0, 1, 1, 1], [0], [0]>} : vector<8x8x8xbf16>, vector<8x8x8xbf16>, vector<8x8x8xf32> -> vector<8x8x8xf32>
    "tpu.trace_stop"() : () -> ()
    %71 = vector.broadcast %5 : vector<8x1x8xf32> to vector<8x8x8xf32>
    %72 = arith.addf %70, %71 : vector<8x8x8xf32>
    %cst_23 = arith.constant dense<0xFF800000> : vector<8x8xf32>
    %73 = vector.multi_reduction <maximumf>, %72, %cst_23 [2] : vector<8x8x8xf32> to vector<8x8xf32>
    %74 = vector.shape_cast %73 : vector<8x8xf32> to vector<8x8x1xf32>
    %75 = vector.broadcast %74 : vector<8x8x1xf32> to vector<8x8x8xf32>
    %76 = arith.subf %72, %75 : vector<8x8x8xf32>
    %77 = math.exp %76 : vector<8x8x8xf32>
    %cst_24 = arith.constant dense<0.000000e+00> : vector<8x8xf32>
    %78 = vector.multi_reduction <add>, %77, %cst_24 [2] : vector<8x8x8xf32> to vector<8x8xf32>
    %79 = vector.shape_cast %78 : vector<8x8xf32> to vector<8x8x1xf32>
    %80 = tpu.reciprocal %79 {approx = true} : vector<8x8x1xf32> -> vector<8x8x1xf32>
    %81 = vector.broadcast %80 : vector<8x8x1xf32> to vector<8x8x8xf32>
    %82 = arith.mulf %77, %81 : vector<8x8x8xf32>
    %83 = arith.truncf %82 : vector<8x8x8xf32> to vector<8x8x8xbf16>
    %84 = arith.truncf %67 : vector<8x8x8xf32> to vector<8x8x8xbf16>
    "tpu.trace_start"() <{level = 10 : i32, message = "nqk,nkd->nqd"}> : () -> ()
    %cst_25 = arith.constant dense<0.000000e+00> : vector<8x8x8xf32>
    %85 = tpu.matmul %83, %84, %cst_25 {dimension_numbers = #tpu.dot_dimension_numbers<[2], [1], [1], [2], [0, 0, 0, 1, 1, 2], [0], [0]>} : vector<8x8x8xbf16>, vector<8x8x8xbf16>, vector<8x8x8xf32> -> vector<8x8x8xf32>
    "tpu.trace_stop"() : () -> ()
    %86 = vector.shape_cast %85 : vector<8x8x8xf32> to vector<4x16x8xf32>
    %87 = vector.extract_strided_slice %86 {offsets = [0, 0, 0], sizes = [1, 16, 8], strides = [1, 1, 1]} : vector<4x16x8xf32> to vector<1x16x8xf32>
    %88 = vector.shape_cast %87 : vector<1x16x8xf32> to vector<16x8xf32>
    %89 = vector.extract_strided_slice %86 {offsets = [1, 0, 0], sizes = [1, 16, 8], strides = [1, 1, 1]} : vector<4x16x8xf32> to vector<1x16x8xf32>
    %90 = vector.shape_cast %89 : vector<1x16x8xf32> to vector<16x8xf32>
    %91 = vector.extract_strided_slice %86 {offsets = [2, 0, 0], sizes = [1, 16, 8], strides = [1, 1, 1]} : vector<4x16x8xf32> to vector<1x16x8xf32>
    %92 = vector.shape_cast %91 : vector<1x16x8xf32> to vector<16x8xf32>
    %93 = vector.extract_strided_slice %86 {offsets = [3, 0, 0], sizes = [1, 16, 8], strides = [1, 1, 1]} : vector<4x16x8xf32> to vector<1x16x8xf32>
    %94 = vector.shape_cast %93 : vector<1x16x8xf32> to vector<16x8xf32>
    %95 = tpu.concatenate %88, %90, %92, %94 in 1 : vector<16x8xf32>, vector<16x8xf32>, vector<16x8xf32>, vector<16x8xf32> -> vector<16x32xf32>
    %96 = arith.truncf %95 : vector<16x32xf32> to vector<16x32xbf16>
    %cst_26 = arith.constant dense<0.000000e+00> : vector<16x32xf32>
    %97 = tpu.matmul %96, %34, %cst_26 {dimension_numbers = #tpu.dot_dimension_numbers<[1], [0], [0], [1], [0, 0, 1, 1], [], []>} : vector<16x32xbf16>, vector<32x32xbf16>, vector<16x32xf32> -> vector<16x32xf32>
    %c0_27 = arith.constant 0 : index
    %c2 = arith.constant 2 : index
    %c0_28 = arith.constant 0 : index
    %98 = vector.load %arg5[%c0_27, %c2, %c0_28] : memref<2x8x96xf32, #tpu.memory_space<vmem>>, vector<1x1x32xf32>
    %99 = vector.shape_cast %98 : vector<1x1x32xf32> to vector<1x32xf32>
    %100 = vector.broadcast %99 : vector<1x32xf32> to vector<16x32xf32>
    %101 = arith.addf %97, %100 : vector<16x32xf32>
    %102 = arith.addf %101, %30 : vector<16x32xf32>
    %c0_29 = arith.constant 0 : index
    %c3 = arith.constant 3 : index
    %c0_30 = arith.constant 0 : index
    %103 = vector.load %arg5[%c0_29, %c3, %c0_30] : memref<2x8x96xf32, #tpu.memory_space<vmem>>, vector<1x1x32xf32>
    %104 = vector.shape_cast %103 : vector<1x1x32xf32> to vector<1x32xf32>
    %c0_31 = arith.constant 0 : index
    %c4 = arith.constant 4 : index
    %c0_32 = arith.constant 0 : index
    %105 = vector.load %arg5[%c0_31, %c4, %c0_32] : memref<2x8x96xf32, #tpu.memory_space<vmem>>, vector<1x1x32xf32>
    %106 = vector.shape_cast %105 : vector<1x1x32xf32> to vector<1x32xf32>
    %cst_33 = arith.constant dense<0.000000e+00> : vector<16xf32>
    %107 = vector.multi_reduction <add>, %102, %cst_33 [1] : vector<16x32xf32> to vector<16xf32>
    %108 = vector.shape_cast %107 : vector<16xf32> to vector<16x1xf32>
    %cst_34 = arith.constant 3.200000e+01 : f32
    %109 = vector.broadcast %cst_34 : f32 to vector<16x1xf32>
    %110 = arith.divf %108, %109 : vector<16x1xf32>
    %111 = vector.broadcast %110 : vector<16x1xf32> to vector<16x32xf32>
    %112 = arith.subf %102, %111 : vector<16x32xf32>
    %113 = arith.mulf %112, %112 : vector<16x32xf32>
    %cst_35 = arith.constant dense<0.000000e+00> : vector<16xf32>
    %114 = vector.multi_reduction <add>, %113, %cst_35 [1] : vector<16x32xf32> to vector<16xf32>
    %115 = vector.shape_cast %114 : vector<16xf32> to vector<16x1xf32>
    %cst_36 = arith.constant 3.200000e+01 : f32
    %116 = vector.broadcast %cst_36 : f32 to vector<16x1xf32>
    %117 = arith.divf %115, %116 : vector<16x1xf32>
    %118 = vector.broadcast %110 : vector<16x1xf32> to vector<16x32xf32>
    %119 = arith.subf %102, %118 : vector<16x32xf32>
    %cst_37 = arith.constant 9.99999996E-13 : f32
    %120 = vector.broadcast %cst_37 : f32 to vector<16x1xf32>
    %121 = arith.addf %117, %120 : vector<16x1xf32>
    %122 = math.rsqrt %121 : vector<16x1xf32>
    %123 = vector.broadcast %122 : vector<16x1xf32> to vector<16x32xf32>
    %124 = arith.mulf %119, %123 : vector<16x32xf32>
    %125 = vector.broadcast %104 : vector<1x32xf32> to vector<16x32xf32>
    %126 = arith.mulf %124, %125 : vector<16x32xf32>
    %127 = vector.broadcast %106 : vector<1x32xf32> to vector<16x32xf32>
    %128 = arith.addf %126, %127 : vector<16x32xf32>
    %c0_38 = arith.constant 0 : index
    %c0_39 = arith.constant 0 : index
    %c0_40 = arith.constant 0 : index
    %129 = vector.load %arg4[%c0_38, %c0_39, %c0_40] : memref<2x96x64xbf16, #tpu.memory_space<vmem>>, vector<1x32x64xbf16>
    %130 = vector.shape_cast %129 : vector<1x32x64xbf16> to vector<32x64xbf16>
    %c0_41 = arith.constant 0 : index
    %c32 = arith.constant 32 : index
    %c0_42 = arith.constant 0 : index
    %131 = vector.load %arg4[%c0_41, %c32, %c0_42] : memref<2x96x64xbf16, #tpu.memory_space<vmem>>, vector<1x64x32xbf16>
    %132 = vector.shape_cast %131 : vector<1x64x32xbf16> to vector<64x32xbf16>
    %133 = arith.truncf %128 : vector<16x32xf32> to vector<16x32xbf16>
    %cst_43 = arith.constant dense<0.000000e+00> : vector<16x64xf32>
    %134 = tpu.matmul %133, %130, %cst_43 {dimension_numbers = #tpu.dot_dimension_numbers<[1], [0], [0], [1], [0, 0, 1, 1], [], []>} : vector<16x32xbf16>, vector<32x64xbf16>, vector<16x64xf32> -> vector<16x64xf32>
    %c0_44 = arith.constant 0 : index
    %c1_45 = arith.constant 1 : index
    %c0_46 = arith.constant 0 : index
    %135 = vector.load %arg5[%c0_44, %c1_45, %c0_46] : memref<2x8x96xf32, #tpu.memory_space<vmem>>, vector<1x1x64xf32>
    %136 = vector.shape_cast %135 : vector<1x1x64xf32> to vector<1x64xf32>
    %137 = vector.broadcast %136 : vector<1x64xf32> to vector<16x64xf32>
    %138 = arith.addf %134, %137 : vector<16x64xf32>
    %139 = arith.mulf %138, %138 : vector<16x64xf32>
    %140 = arith.mulf %138, %139 : vector<16x64xf32>
    %cst_47 = arith.constant 4.471500e-02 : f32
    %141 = vector.broadcast %cst_47 : f32 to vector<16x64xf32>
    %142 = arith.mulf %141, %140 : vector<16x64xf32>
    %143 = arith.addf %138, %142 : vector<16x64xf32>
    %cst_48 = arith.constant 0.797884583 : f32
    %144 = vector.broadcast %cst_48 : f32 to vector<16x64xf32>
    %145 = arith.mulf %144, %143 : vector<16x64xf32>
    %146 = math.tanh %145 : vector<16x64xf32>
    %cst_49 = arith.constant 1.000000e+00 : f32
    %147 = vector.broadcast %cst_49 : f32 to vector<16x64xf32>
    %148 = arith.addf %147, %146 : vector<16x64xf32>
    %cst_50 = arith.constant 5.000000e-01 : f32
    %149 = vector.broadcast %cst_50 : f32 to vector<16x64xf32>
    %150 = arith.mulf %149, %148 : vector<16x64xf32>
    %151 = arith.mulf %138, %150 : vector<16x64xf32>
    %152 = arith.truncf %151 : vector<16x64xf32> to vector<16x64xbf16>
    %cst_51 = arith.constant dense<0.000000e+00> : vector<16x32xf32>
    %153 = tpu.matmul %152, %132, %cst_51 {dimension_numbers = #tpu.dot_dimension_numbers<[1], [0], [0], [1], [0, 0, 1, 1], [], []>} : vector<16x64xbf16>, vector<64x32xbf16>, vector<16x32xf32> -> vector<16x32xf32>
    %c0_52 = arith.constant 0 : index
    %c5 = arith.constant 5 : index
    %c0_53 = arith.constant 0 : index
    %154 = vector.load %arg5[%c0_52, %c5, %c0_53] : memref<2x8x96xf32, #tpu.memory_space<vmem>>, vector<1x1x32xf32>
    %155 = vector.shape_cast %154 : vector<1x1x32xf32> to vector<1x32xf32>
    %156 = vector.broadcast %155 : vector<1x32xf32> to vector<16x32xf32>
    %157 = arith.addf %153, %156 : vector<16x32xf32>
    %158 = arith.addf %157, %128 : vector<16x32xf32>
    %c0_54 = arith.constant 0 : index
    %c6 = arith.constant 6 : index
    %c0_55 = arith.constant 0 : index
    %159 = vector.load %arg5[%c0_54, %c6, %c0_55] : memref<2x8x96xf32, #tpu.memory_space<vmem>>, vector<1x1x32xf32>
    %160 = vector.shape_cast %159 : vector<1x1x32xf32> to vector<1x32xf32>
    %c0_56 = arith.constant 0 : index
    %c7 = arith.constant 7 : index
    %c0_57 = arith.constant 0 : index
    %161 = vector.load %arg5[%c0_56, %c7, %c0_57] : memref<2x8x96xf32, #tpu.memory_space<vmem>>, vector<1x1x32xf32>
    %162 = vector.shape_cast %161 : vector<1x1x32xf32> to vector<1x32xf32>
    %cst_58 = arith.constant dense<0.000000e+00> : vector<16xf32>
    %163 = vector.multi_reduction <add>, %158, %cst_58 [1] : vector<16x32xf32> to vector<16xf32>
    %164 = vector.shape_cast %163 : vector<16xf32> to vector<16x1xf32>
    %cst_59 = arith.constant 3.200000e+01 : f32
    %165 = vector.broadcast %cst_59 : f32 to vector<16x1xf32>
    %166 = arith.divf %164, %165 : vector<16x1xf32>
    %167 = vector.broadcast %166 : vector<16x1xf32> to vector<16x32xf32>
    %168 = arith.subf %158, %167 : vector<16x32xf32>
    %169 = arith.mulf %168, %168 : vector<16x32xf32>
    %cst_60 = arith.constant dense<0.000000e+00> : vector<16xf32>
    %170 = vector.multi_reduction <add>, %169, %cst_60 [1] : vector<16x32xf32> to vector<16xf32>
    %171 = vector.shape_cast %170 : vector<16xf32> to vector<16x1xf32>
    %cst_61 = arith.constant 3.200000e+01 : f32
    %172 = vector.broadcast %cst_61 : f32 to vector<16x1xf32>
    %173 = arith.divf %171, %172 : vector<16x1xf32>
    %174 = vector.broadcast %166 : vector<16x1xf32> to vector<16x32xf32>
    %175 = arith.subf %158, %174 : vector<16x32xf32>
    %cst_62 = arith.constant 9.99999996E-13 : f32
    %176 = vector.broadcast %cst_62 : f32 to vector<16x1xf32>
    %177 = arith.addf %173, %176 : vector<16x1xf32>
    %178 = math.rsqrt %177 : vector<16x1xf32>
    %179 = vector.broadcast %178 : vector<16x1xf32> to vector<16x32xf32>
    %180 = arith.mulf %175, %179 : vector<16x32xf32>
    %181 = vector.broadcast %160 : vector<1x32xf32> to vector<16x32xf32>
    %182 = arith.mulf %180, %181 : vector<16x32xf32>
    %183 = vector.broadcast %162 : vector<1x32xf32> to vector<16x32xf32>
    %184 = arith.addf %182, %183 : vector<16x32xf32>
    %c1_63 = arith.constant 1 : index
    %c0_64 = arith.constant 0 : index
    %c0_65 = arith.constant 0 : index
    %185 = vector.load %arg3[%c1_63, %c0_64, %c0_65] : memref<2x32x128xbf16, #tpu.memory_space<vmem>>, vector<1x32x96xbf16>
    %186 = vector.shape_cast %185 : vector<1x32x96xbf16> to vector<32x96xbf16>
    %c1_66 = arith.constant 1 : index
    %c0_67 = arith.constant 0 : index
    %c96_68 = arith.constant 96 : index
    %187 = vector.load %arg3[%c1_66, %c0_67, %c96_68] : memref<2x32x128xbf16, #tpu.memory_space<vmem>>, vector<1x32x32xbf16>
    %188 = vector.shape_cast %187 : vector<1x32x32xbf16> to vector<32x32xbf16>
    %189 = arith.truncf %184 : vector<16x32xf32> to vector<16x32xbf16>
    %cst_69 = arith.constant dense<0.000000e+00> : vector<16x96xf32>
    %190 = tpu.matmul %189, %186, %cst_69 {dimension_numbers = #tpu.dot_dimension_numbers<[1], [0], [0], [1], [0, 0, 1, 1], [], []>} : vector<16x32xbf16>, vector<32x96xbf16>, vector<16x96xf32> -> vector<16x96xf32>
    %c1_70 = arith.constant 1 : index
    %c0_71 = arith.constant 0 : index
    %c0_72 = arith.constant 0 : index
    %191 = vector.load %arg5[%c1_70, %c0_71, %c0_72] : memref<2x8x96xf32, #tpu.memory_space<vmem>>, vector<1x1x96xf32>
    %192 = vector.shape_cast %191 : vector<1x1x96xf32> to vector<1x96xf32>
    %193 = vector.broadcast %192 : vector<1x96xf32> to vector<16x96xf32>
    %194 = arith.addf %190, %193 : vector<16x96xf32>
    %195 = vector.extract_strided_slice %194 {offsets = [0, 0], sizes = [16, 8], strides = [1, 1]} : vector<16x96xf32> to vector<16x8xf32>
    %196 = vector.shape_cast %195 : vector<16x8xf32> to vector<2x8x8xf32>
    %197 = vector.extract_strided_slice %194 {offsets = [0, 8], sizes = [16, 8], strides = [1, 1]} : vector<16x96xf32> to vector<16x8xf32>
    %198 = vector.shape_cast %197 : vector<16x8xf32> to vector<2x8x8xf32>
    %199 = vector.extract_strided_slice %194 {offsets = [0, 16], sizes = [16, 8], strides = [1, 1]} : vector<16x96xf32> to vector<16x8xf32>
    %200 = vector.shape_cast %199 : vector<16x8xf32> to vector<2x8x8xf32>
    %201 = vector.extract_strided_slice %194 {offsets = [0, 24], sizes = [16, 8], strides = [1, 1]} : vector<16x96xf32> to vector<16x8xf32>
    %202 = vector.shape_cast %201 : vector<16x8xf32> to vector<2x8x8xf32>
    %203 = tpu.concatenate %196, %198, %200, %202 in 0 : vector<2x8x8xf32>, vector<2x8x8xf32>, vector<2x8x8xf32>, vector<2x8x8xf32> -> vector<8x8x8xf32>
    %204 = vector.extract_strided_slice %194 {offsets = [0, 32], sizes = [16, 8], strides = [1, 1]} : vector<16x96xf32> to vector<16x8xf32>
    %205 = vector.shape_cast %204 : vector<16x8xf32> to vector<2x8x8xf32>
    %206 = vector.extract_strided_slice %194 {offsets = [0, 40], sizes = [16, 8], strides = [1, 1]} : vector<16x96xf32> to vector<16x8xf32>
    %207 = vector.shape_cast %206 : vector<16x8xf32> to vector<2x8x8xf32>
    %208 = vector.extract_strided_slice %194 {offsets = [0, 48], sizes = [16, 8], strides = [1, 1]} : vector<16x96xf32> to vector<16x8xf32>
    %209 = vector.shape_cast %208 : vector<16x8xf32> to vector<2x8x8xf32>
    %210 = vector.extract_strided_slice %194 {offsets = [0, 56], sizes = [16, 8], strides = [1, 1]} : vector<16x96xf32> to vector<16x8xf32>
    %211 = vector.shape_cast %210 : vector<16x8xf32> to vector<2x8x8xf32>
    %212 = tpu.concatenate %205, %207, %209, %211 in 0 : vector<2x8x8xf32>, vector<2x8x8xf32>, vector<2x8x8xf32>, vector<2x8x8xf32> -> vector<8x8x8xf32>
    %213 = vector.extract_strided_slice %194 {offsets = [0, 64], sizes = [16, 8], strides = [1, 1]} : vector<16x96xf32> to vector<16x8xf32>
    %214 = vector.shape_cast %213 : vector<16x8xf32> to vector<2x8x8xf32>
    %215 = vector.extract_strided_slice %194 {offsets = [0, 72], sizes = [16, 8], strides = [1, 1]} : vector<16x96xf32> to vector<16x8xf32>
    %216 = vector.shape_cast %215 : vector<16x8xf32> to vector<2x8x8xf32>
    %217 = vector.extract_strided_slice %194 {offsets = [0, 80], sizes = [16, 8], strides = [1, 1]} : vector<16x96xf32> to vector<16x8xf32>
    %218 = vector.shape_cast %217 : vector<16x8xf32> to vector<2x8x8xf32>
    %219 = vector.extract_strided_slice %194 {offsets = [0, 88], sizes = [16, 8], strides = [1, 1]} : vector<16x96xf32> to vector<16x8xf32>
    %220 = vector.shape_cast %219 : vector<16x8xf32> to vector<2x8x8xf32>
    %221 = tpu.concatenate %214, %216, %218, %220 in 0 : vector<2x8x8xf32>, vector<2x8x8xf32>, vector<2x8x8xf32>, vector<2x8x8xf32> -> vector<8x8x8xf32>
    %222 = arith.truncf %203 : vector<8x8x8xf32> to vector<8x8x8xbf16>
    %223 = arith.truncf %212 : vector<8x8x8xf32> to vector<8x8x8xbf16>
    "tpu.trace_start"() <{level = 10 : i32, message = "nqd,nkd->nqk"}> : () -> ()
    %cst_73 = arith.constant dense<0.000000e+00> : vector<8x8x8xf32>
    %224 = tpu.matmul %222, %223, %cst_73 {dimension_numbers = #tpu.dot_dimension_numbers<[2], [2], [1], [1], [0, 0, 0, 1, 1, 1], [0], [0]>} : vector<8x8x8xbf16>, vector<8x8x8xbf16>, vector<8x8x8xf32> -> vector<8x8x8xf32>
    "tpu.trace_stop"() : () -> ()
    %225 = vector.broadcast %5 : vector<8x1x8xf32> to vector<8x8x8xf32>
    %226 = arith.addf %224, %225 : vector<8x8x8xf32>
    %cst_74 = arith.constant dense<0xFF800000> : vector<8x8xf32>
    %227 = vector.multi_reduction <maximumf>, %226, %cst_74 [2] : vector<8x8x8xf32> to vector<8x8xf32>
    %228 = vector.shape_cast %227 : vector<8x8xf32> to vector<8x8x1xf32>
    %229 = vector.broadcast %228 : vector<8x8x1xf32> to vector<8x8x8xf32>
    %230 = arith.subf %226, %229 : vector<8x8x8xf32>
    %231 = math.exp %230 : vector<8x8x8xf32>
    %cst_75 = arith.constant dense<0.000000e+00> : vector<8x8xf32>
    %232 = vector.multi_reduction <add>, %231, %cst_75 [2] : vector<8x8x8xf32> to vector<8x8xf32>
    %233 = vector.shape_cast %232 : vector<8x8xf32> to vector<8x8x1xf32>
    %234 = tpu.reciprocal %233 {approx = true} : vector<8x8x1xf32> -> vector<8x8x1xf32>
    %235 = vector.broadcast %234 : vector<8x8x1xf32> to vector<8x8x8xf32>
    %236 = arith.mulf %231, %235 : vector<8x8x8xf32>
    %237 = arith.truncf %236 : vector<8x8x8xf32> to vector<8x8x8xbf16>
    %238 = arith.truncf %221 : vector<8x8x8xf32> to vector<8x8x8xbf16>
    "tpu.trace_start"() <{level = 10 : i32, message = "nqk,nkd->nqd"}> : () -> ()
    %cst_76 = arith.constant dense<0.000000e+00> : vector<8x8x8xf32>
    %239 = tpu.matmul %237, %238, %cst_76 {dimension_numbers = #tpu.dot_dimension_numbers<[2], [1], [1], [2], [0, 0, 0, 1, 1, 2], [0], [0]>} : vector<8x8x8xbf16>, vector<8x8x8xbf16>, vector<8x8x8xf32> -> vector<8x8x8xf32>
    "tpu.trace_stop"() : () -> ()
    %240 = vector.shape_cast %239 : vector<8x8x8xf32> to vector<4x16x8xf32>
    %241 = vector.extract_strided_slice %240 {offsets = [0, 0, 0], sizes = [1, 16, 8], strides = [1, 1, 1]} : vector<4x16x8xf32> to vector<1x16x8xf32>
    %242 = vector.shape_cast %241 : vector<1x16x8xf32> to vector<16x8xf32>
    %243 = vector.extract_strided_slice %240 {offsets = [1, 0, 0], sizes = [1, 16, 8], strides = [1, 1, 1]} : vector<4x16x8xf32> to vector<1x16x8xf32>
    %244 = vector.shape_cast %243 : vector<1x16x8xf32> to vector<16x8xf32>
    %245 = vector.extract_strided_slice %240 {offsets = [2, 0, 0], sizes = [1, 16, 8], strides = [1, 1, 1]} : vector<4x16x8xf32> to vector<1x16x8xf32>
    %246 = vector.shape_cast %245 : vector<1x16x8xf32> to vector<16x8xf32>
    %247 = vector.extract_strided_slice %240 {offsets = [3, 0, 0], sizes = [1, 16, 8], strides = [1, 1, 1]} : vector<4x16x8xf32> to vector<1x16x8xf32>
    %248 = vector.shape_cast %247 : vector<1x16x8xf32> to vector<16x8xf32>
    %249 = tpu.concatenate %242, %244, %246, %248 in 1 : vector<16x8xf32>, vector<16x8xf32>, vector<16x8xf32>, vector<16x8xf32> -> vector<16x32xf32>
    %250 = arith.truncf %249 : vector<16x32xf32> to vector<16x32xbf16>
    %cst_77 = arith.constant dense<0.000000e+00> : vector<16x32xf32>
    %251 = tpu.matmul %250, %188, %cst_77 {dimension_numbers = #tpu.dot_dimension_numbers<[1], [0], [0], [1], [0, 0, 1, 1], [], []>} : vector<16x32xbf16>, vector<32x32xbf16>, vector<16x32xf32> -> vector<16x32xf32>
    %c1_78 = arith.constant 1 : index
    %c2_79 = arith.constant 2 : index
    %c0_80 = arith.constant 0 : index
    %252 = vector.load %arg5[%c1_78, %c2_79, %c0_80] : memref<2x8x96xf32, #tpu.memory_space<vmem>>, vector<1x1x32xf32>
    %253 = vector.shape_cast %252 : vector<1x1x32xf32> to vector<1x32xf32>
    %254 = vector.broadcast %253 : vector<1x32xf32> to vector<16x32xf32>
    %255 = arith.addf %251, %254 : vector<16x32xf32>
    %256 = arith.addf %255, %184 : vector<16x32xf32>
    %c1_81 = arith.constant 1 : index
    %c3_82 = arith.constant 3 : index
    %c0_83 = arith.constant 0 : index
    %257 = vector.load %arg5[%c1_81, %c3_82, %c0_83] : memref<2x8x96xf32, #tpu.memory_space<vmem>>, vector<1x1x32xf32>
    %258 = vector.shape_cast %257 : vector<1x1x32xf32> to vector<1x32xf32>
    %c1_84 = arith.constant 1 : index
    %c4_85 = arith.constant 4 : index
    %c0_86 = arith.constant 0 : index
    %259 = vector.load %arg5[%c1_84, %c4_85, %c0_86] : memref<2x8x96xf32, #tpu.memory_space<vmem>>, vector<1x1x32xf32>
    %260 = vector.shape_cast %259 : vector<1x1x32xf32> to vector<1x32xf32>
    %cst_87 = arith.constant dense<0.000000e+00> : vector<16xf32>
    %261 = vector.multi_reduction <add>, %256, %cst_87 [1] : vector<16x32xf32> to vector<16xf32>
    %262 = vector.shape_cast %261 : vector<16xf32> to vector<16x1xf32>
    %cst_88 = arith.constant 3.200000e+01 : f32
    %263 = vector.broadcast %cst_88 : f32 to vector<16x1xf32>
    %264 = arith.divf %262, %263 : vector<16x1xf32>
    %265 = vector.broadcast %264 : vector<16x1xf32> to vector<16x32xf32>
    %266 = arith.subf %256, %265 : vector<16x32xf32>
    %267 = arith.mulf %266, %266 : vector<16x32xf32>
    %cst_89 = arith.constant dense<0.000000e+00> : vector<16xf32>
    %268 = vector.multi_reduction <add>, %267, %cst_89 [1] : vector<16x32xf32> to vector<16xf32>
    %269 = vector.shape_cast %268 : vector<16xf32> to vector<16x1xf32>
    %cst_90 = arith.constant 3.200000e+01 : f32
    %270 = vector.broadcast %cst_90 : f32 to vector<16x1xf32>
    %271 = arith.divf %269, %270 : vector<16x1xf32>
    %272 = vector.broadcast %264 : vector<16x1xf32> to vector<16x32xf32>
    %273 = arith.subf %256, %272 : vector<16x32xf32>
    %cst_91 = arith.constant 9.99999996E-13 : f32
    %274 = vector.broadcast %cst_91 : f32 to vector<16x1xf32>
    %275 = arith.addf %271, %274 : vector<16x1xf32>
    %276 = math.rsqrt %275 : vector<16x1xf32>
    %277 = vector.broadcast %276 : vector<16x1xf32> to vector<16x32xf32>
    %278 = arith.mulf %273, %277 : vector<16x32xf32>
    %279 = vector.broadcast %258 : vector<1x32xf32> to vector<16x32xf32>
    %280 = arith.mulf %278, %279 : vector<16x32xf32>
    %281 = vector.broadcast %260 : vector<1x32xf32> to vector<16x32xf32>
    %282 = arith.addf %280, %281 : vector<16x32xf32>
    %c1_92 = arith.constant 1 : index
    %c0_93 = arith.constant 0 : index
    %c0_94 = arith.constant 0 : index
    %283 = vector.load %arg4[%c1_92, %c0_93, %c0_94] : memref<2x96x64xbf16, #tpu.memory_space<vmem>>, vector<1x32x64xbf16>
    %284 = vector.shape_cast %283 : vector<1x32x64xbf16> to vector<32x64xbf16>
    %c1_95 = arith.constant 1 : index
    %c32_96 = arith.constant 32 : index
    %c0_97 = arith.constant 0 : index
    %285 = vector.load %arg4[%c1_95, %c32_96, %c0_97] : memref<2x96x64xbf16, #tpu.memory_space<vmem>>, vector<1x64x32xbf16>
    %286 = vector.shape_cast %285 : vector<1x64x32xbf16> to vector<64x32xbf16>
    %287 = arith.truncf %282 : vector<16x32xf32> to vector<16x32xbf16>
    %cst_98 = arith.constant dense<0.000000e+00> : vector<16x64xf32>
    %288 = tpu.matmul %287, %284, %cst_98 {dimension_numbers = #tpu.dot_dimension_numbers<[1], [0], [0], [1], [0, 0, 1, 1], [], []>} : vector<16x32xbf16>, vector<32x64xbf16>, vector<16x64xf32> -> vector<16x64xf32>
    %c1_99 = arith.constant 1 : index
    %c1_100 = arith.constant 1 : index
    %c0_101 = arith.constant 0 : index
    %289 = vector.load %arg5[%c1_99, %c1_100, %c0_101] : memref<2x8x96xf32, #tpu.memory_space<vmem>>, vector<1x1x64xf32>
    %290 = vector.shape_cast %289 : vector<1x1x64xf32> to vector<1x64xf32>
    %291 = vector.broadcast %290 : vector<1x64xf32> to vector<16x64xf32>
    %292 = arith.addf %288, %291 : vector<16x64xf32>
    %293 = arith.mulf %292, %292 : vector<16x64xf32>
    %294 = arith.mulf %292, %293 : vector<16x64xf32>
    %cst_102 = arith.constant 4.471500e-02 : f32
    %295 = vector.broadcast %cst_102 : f32 to vector<16x64xf32>
    %296 = arith.mulf %295, %294 : vector<16x64xf32>
    %297 = arith.addf %292, %296 : vector<16x64xf32>
    %cst_103 = arith.constant 0.797884583 : f32
    %298 = vector.broadcast %cst_103 : f32 to vector<16x64xf32>
    %299 = arith.mulf %298, %297 : vector<16x64xf32>
    %300 = math.tanh %299 : vector<16x64xf32>
    %cst_104 = arith.constant 1.000000e+00 : f32
    %301 = vector.broadcast %cst_104 : f32 to vector<16x64xf32>
    %302 = arith.addf %301, %300 : vector<16x64xf32>
    %cst_105 = arith.constant 5.000000e-01 : f32
    %303 = vector.broadcast %cst_105 : f32 to vector<16x64xf32>
    %304 = arith.mulf %303, %302 : vector<16x64xf32>
    %305 = arith.mulf %292, %304 : vector<16x64xf32>
    %306 = arith.truncf %305 : vector<16x64xf32> to vector<16x64xbf16>
    %cst_106 = arith.constant dense<0.000000e+00> : vector<16x32xf32>
    %307 = tpu.matmul %306, %286, %cst_106 {dimension_numbers = #tpu.dot_dimension_numbers<[1], [0], [0], [1], [0, 0, 1, 1], [], []>} : vector<16x64xbf16>, vector<64x32xbf16>, vector<16x32xf32> -> vector<16x32xf32>
    %c1_107 = arith.constant 1 : index
    %c5_108 = arith.constant 5 : index
    %c0_109 = arith.constant 0 : index
    %308 = vector.load %arg5[%c1_107, %c5_108, %c0_109] : memref<2x8x96xf32, #tpu.memory_space<vmem>>, vector<1x1x32xf32>
    %309 = vector.shape_cast %308 : vector<1x1x32xf32> to vector<1x32xf32>
    %310 = vector.broadcast %309 : vector<1x32xf32> to vector<16x32xf32>
    %311 = arith.addf %307, %310 : vector<16x32xf32>
    %312 = arith.addf %311, %282 : vector<16x32xf32>
    %c1_110 = arith.constant 1 : index
    %c6_111 = arith.constant 6 : index
    %c0_112 = arith.constant 0 : index
    %313 = vector.load %arg5[%c1_110, %c6_111, %c0_112] : memref<2x8x96xf32, #tpu.memory_space<vmem>>, vector<1x1x32xf32>
    %314 = vector.shape_cast %313 : vector<1x1x32xf32> to vector<1x32xf32>
    %c1_113 = arith.constant 1 : index
    %c7_114 = arith.constant 7 : index
    %c0_115 = arith.constant 0 : index
    %315 = vector.load %arg5[%c1_113, %c7_114, %c0_115] : memref<2x8x96xf32, #tpu.memory_space<vmem>>, vector<1x1x32xf32>
    %316 = vector.shape_cast %315 : vector<1x1x32xf32> to vector<1x32xf32>
    %cst_116 = arith.constant dense<0.000000e+00> : vector<16xf32>
    %317 = vector.multi_reduction <add>, %312, %cst_116 [1] : vector<16x32xf32> to vector<16xf32>
    %318 = vector.shape_cast %317 : vector<16xf32> to vector<16x1xf32>
    %cst_117 = arith.constant 3.200000e+01 : f32
    %319 = vector.broadcast %cst_117 : f32 to vector<16x1xf32>
    %320 = arith.divf %318, %319 : vector<16x1xf32>
    %321 = vector.broadcast %320 : vector<16x1xf32> to vector<16x32xf32>
    %322 = arith.subf %312, %321 : vector<16x32xf32>
    %323 = arith.mulf %322, %322 : vector<16x32xf32>
    %cst_118 = arith.constant dense<0.000000e+00> : vector<16xf32>
    %324 = vector.multi_reduction <add>, %323, %cst_118 [1] : vector<16x32xf32> to vector<16xf32>
    %325 = vector.shape_cast %324 : vector<16xf32> to vector<16x1xf32>
    %cst_119 = arith.constant 3.200000e+01 : f32
    %326 = vector.broadcast %cst_119 : f32 to vector<16x1xf32>
    %327 = arith.divf %325, %326 : vector<16x1xf32>
    %328 = vector.broadcast %320 : vector<16x1xf32> to vector<16x32xf32>
    %329 = arith.subf %312, %328 : vector<16x32xf32>
    %cst_120 = arith.constant 9.99999996E-13 : f32
    %330 = vector.broadcast %cst_120 : f32 to vector<16x1xf32>
    %331 = arith.addf %327, %330 : vector<16x1xf32>
    %332 = math.rsqrt %331 : vector<16x1xf32>
    %333 = vector.broadcast %332 : vector<16x1xf32> to vector<16x32xf32>
    %334 = arith.mulf %329, %333 : vector<16x32xf32>
    %335 = vector.broadcast %314 : vector<1x32xf32> to vector<16x32xf32>
    %336 = arith.mulf %334, %335 : vector<16x32xf32>
    %337 = vector.broadcast %316 : vector<1x32xf32> to vector<16x32xf32>
    %338 = arith.addf %336, %337 : vector<16x32xf32>
    %339 = arith.truncf %338 : vector<16x32xf32> to vector<16x32xbf16>
    %c0_121 = arith.constant 0 : index
    %c0_122 = arith.constant 0 : index
    %340 = vector.load %arg6[%c0_121, %c0_122] : memref<33x16xf32, #tpu.memory_space<vmem>>, vector<32x16xf32>
    %341 = arith.truncf %340 : vector<32x16xf32> to vector<32x16xbf16>
    %cst_123 = arith.constant dense<0.000000e+00> : vector<16x16xf32>
    %342 = tpu.matmul %339, %341, %cst_123 {dimension_numbers = #tpu.dot_dimension_numbers<[1], [0], [0], [1], [0, 0, 1, 1], [], []>} : vector<16x32xbf16>, vector<32x16xbf16>, vector<16x16xf32> -> vector<16x16xf32>
    %c32_124 = arith.constant 32 : index
    %c0_125 = arith.constant 0 : index
    %343 = vector.load %arg6[%c32_124, %c0_125] : memref<33x16xf32, #tpu.memory_space<vmem>>, vector<1x16xf32>
    %344 = vector.broadcast %343 : vector<1x16xf32> to vector<16x16xf32>
    %345 = arith.addf %342, %344 : vector<16x16xf32>
    %c0_126 = arith.constant 0 : index
    %c0_127 = arith.constant 0 : index
    %346 = vector.load %arg7[%c0_126, %c0_127] : memref<16x16xf32, #tpu.memory_space<vmem>>, vector<16x16xf32>
    tpu.vector_store %arg7[%c0_126, %c0_127], %345 {strides = array<i32>} : memref<16x16xf32, #tpu.memory_space<vmem>>, vector<16x16xf32>,
    return
  }
}

</mosaic_0001>

<bundles_post_ra>
// kernel: text_encoder_forward.1
= control target key start
LH: loop header
LB: loop body
LE: loop exit
PB: predicated region body
PF: predicated region fallthrough
CT: control target
= control target key end

     0   :  { %vm37_vm0 = vcmask 261120   ;;  %v3409_v15 = vmov 0.0   ;;  %vm3410_vm1 = vmmov 0   ;;  %s3412_s14 = smov 120   ;;  %s3413_s15 = smov 104   ;;  %vm186_vm2 = vcmask 64512   ;;  %s4116_s0 = inlined_call_operand.vmem [shape: f32[16,32], index: 0, kind: input, shape index: {}]   ;;  %s4117_s3 = inlined_call_operand.vmem [shape: bf16[2,32,128], index: 3, kind: input, shape index: {}]   ;;  %s4118_s2 = inlined_call_operand.vmem [shape: f32[2,32], index: 2, kind: input, shape index: {}]   ;;  %s4119_s5 = inlined_call_operand.vmem [shape: f32[2,8,96], index: 5, kind: input, shape index: {}]   ;;  %s4120_s1 = inlined_call_operand.vmem [shape: f32[2,1,8], index: 1, kind: input, shape index: {}]   ;;  %s4121_s4 = inlined_call_operand.vmem [shape: bf16[2,96,64], index: 4, kind: input, shape index: {}]   ;;  %s4122_s6 = inlined_call_operand.vmem [shape: f32[33,16], index: 6, kind: input, shape index: {}]   ;;  %s4123_s7 = inlined_call_operand.vmem [shape: f32[16,16], index: 7, kind: output, shape index: {}]  }
   0x1   :  { %v33_v0 = vld [vmem:[%s4116_s0] sm:$0xff]  ;;  %v34_v1 = vld [vmem:[%s4116_s0 + $0x8] sm:$0xff]  ;;  %2958 = vmatprep.subr.bf16.mxu0 %v3409_v15  ;;  %2966 = vmatprep.subr.bf16.mxu1 %v3409_v15  ;;  %s3414_s16 = smov 96   ;;  %s3415_s17 = smov 64   ;;  %vm677_vm3 = vcmask 1043456   ;;  %vm1083_vm4 = vcmask 130048  }
   0x2   :  { %v38_v2 = vsel %vm37_vm0, %v33_v0, 0.0  ;;  %v41_v3 = vsel %vm37_vm0, %v34_v1, 0.0  ;;  %v3473_v14 = vld [vmem:[%s4117_s3] sm:$0xff]   ;;  %v3481_v16 = vld [vmem:[%s4117_s3 + $0x8] sm:$0xff]   ;;  %2962 = vmatprep.mubr.msk.bf16.mxu0 %vm3410_vm1, %v3409_v15  ;;  %2968 = vmatprep.mubr.msk.bf16.mxu1 %vm3410_vm1, %v3409_v15  ;;  %s3417_s22 = smov 8   ;;  %s3418_s23 = smov 16  }
   0x3   :  { %39 = vadd.xlane.f32.xlu0 %v38_v2  ;;  %2959 = vmatpush3.bf16.msra.mxu0 %v3473_v14  ;;  %v2763_v25 = vld [vmem:[%s4118_s2] ss:$0 sm:$0xff]  ;;  %v2764_v29 = vld [vmem:[%s4118_s2 + $0x1] ss:$0 sm:$0xff]  ;;  %s3411_s2 = smov 112   ;;  %s3419_s24 = smov 24  }
   0x4   :  { %2960 = vmatprep.subr.bf16.mxu0 %v3409_v15  ;;  %v2765_v34 = vld [vmem:[%s4119_s5] ss:$0 sm:$0xff]  ;;  %vm1086_vm5 = vcmask 195584   ;;  %vm1309_vm6 = vcmask 523264  }
   0x7   :  { %42 = vadd.xlane.f32.xlu0 %v41_v3  ;;  %2961 = vmatpush3.bf16.msra.mxu0 %v3481_v16 }
   0x8   :  { %2972 = vmatprep.subr.bf16.mxu0 %v3409_v15 }
  0x90   :  { %v40_v4 = vpop.xlane.xlu0 %39 }
  0x91   :  { %v45_v5 = vmul.f32 0.03125, %v40_v4 }
  0x93   :  { %v47_v6 = vsub.f32 %v33_v0, %v45_v5 }
  0x94   :  { %v43_v7 = vpop.xlane.xlu0 %42 }
  0x95   :  { %v46_v8 = vmul.f32 0.03125, %v43_v7  ;;  %v49_v9 = vmul.f32 %v47_v6, %v47_v6 }
  0x97   :  { %v48_v10 = vsub.f32 %v34_v1, %v46_v8  ;;  %v51_v11 = vsel %vm37_vm0, %v49_v9, 0.0 }
  0x98   :  { %52 = vadd.xlane.f32.xlu1 %v51_v11 }
  0x99   :  { %v50_v12 = vmul.f32 %v48_v10, %v48_v10 }
  0x9b   :  { %v54_v13 = vsel %vm37_vm0, %v50_v12, 0.0 }
  0x9c   :  { %55 = vadd.xlane.f32.xlu1 %v54_v13  ;;  %v173_v13 = vlaneseq }
 0x125   :  { %v53_v17 = vpop.xlane.xlu1 %52 }
 0x126   :  { %v57_v18 = vmul.f32 0.03125, %v53_v17  ;;  %v28_v17 = vld [vmem:[%s4120_s1 + $0x1] sm:$0x1] }
 0x128   :  { %v59_v19 = vadd.f32 1e-12, %v57_v18  ;;  %v30_v18 = vsub.f32 1.0, %v28_v17 }
 0x129   :  { %v56_v20 = vpop.xlane.xlu1 %55 }
 0x12a   :  { %3317 = vrsqrt.f32 %v59_v19  ;;  %v58_v21 = vmul.f32 0.03125, %v56_v20  ;;  %v174_v19 = vshrl.u32 %v173_v13, 7  ;;  %v27_v20 = vld [vmem:[%s4120_s1] sm:$0x1]  ;;  %s3416_s1 = smov 32  }
 0x12c   :  { %v60_v22 = vadd.f32 1e-12, %v58_v21  ;;  %v29_v21 = vsub.f32 1.0, %v27_v20 }
 0x12e   :  { %3319 = vrsqrt.f32 %v60_v22  ;;  %v32_v22 = vmul.f32 -1e+09, %v30_v18 }
 0x134   :  { %v3318_v23 = vpop.eup %3317 }
 0x135   :  { %v63_v24 = vmul.f32 %v3318_v23, %v47_v6  ;;  %v175_v23 = vsub.s32 0, %v174_v19 }
 0x137   :  { %v69_v28 = vmul.f32 %v2763_v25, %v63_v24  ;;  %v31_v24 = vmul.f32 -1e+09, %v29_v21 }
 0x138   :  { %v3320_v26 = vpop.eup %3319 }
 0x139   :  { %v64_v27 = vmul.f32 %v3320_v26, %v48_v10  ;;  %v3496_v31 = vadd.f32 %v2764_v29, %v69_v28 }
 0x13b   :  { %v70_v30 = vmul.f32 %v2763_v25, %v64_v27  ;;  %v3596_v25 = vrot.slane %v32_v22, %v175_v23  ;;  %v3598_v27 = vrot.slane %v31_v24, %v175_v23 }
 0x13d   :  { %v3498_v32 = vadd.f32 %v2764_v29, %v70_v30 }
 0x13f   :  { %v81_v33 = vpack.c.bf16 %v3498_v32, %v3496_v31 }
 0x141   :  { %2963 = vmatmul.mubr.msk.bf16.vlgmr.msra.gmra.mrb[0].mxu0 %vm37_vm0, %v81_v33 }
 0x142   :  { %2974 = vmatprep.mubr.msk.bf16.mxu0 %vm3410_vm1, %v3409_v15 }
 0x214   :  { %v136_v35 = vpop.f32.mrb[0].mxu0 }
 0x215   :  { %v2964_v36 = vpop.f32.mrb[1].mxu0  ;;  %v137_v38 = vadd.f32 %v2765_v34, %v136_v35 }
 0x216   :  { %v139_v37 = vpop.f32.mrb[2].mxu0 }
 0x217   :  { %v140_v39 = vadd.f32 %v2765_v34, %v139_v37  ;;  %v2965_v40 = vpop.f32.mrb[3].mxu0  ;;  %v163_v43 = vpack.c.bf16 %v137_v38, %v137_v38 }
 0x219   :  { %v3246_v41 = vpack.i.bf16 %v140_v39, %v137_v38  ;;  %v3510_v42 = vpack.c.bf16 %v140_v39, %v140_v39 }
 0x21b   :  { %3247 = vrot.lane.b32.xlu1 %v3246_v41, %s3411_s2  ;;  %3242 = vrot.lane.b32.xlu0 %v3246_v41, %s3412_s14 }
 0x21f   :  { %3252 = vrot.lane.b32.xlu1 %v3246_v41, %s3413_s15  ;;  %234 = vrot.lane.b32.xlu0 %v3510_v42, %s3414_s16 }
 0x223   :  { %184 = vrot.lane.b32.xlu1 %v163_v43, %s3414_s16 }
 0x28d   :  { %v3248_v44 = vpop.permute.xlu1 %3247  ;;  %v3243_v45 = vpop.permute.xlu0 %3242 }
 0x28e   :  { %v3245_v46 = vunpack.i.h.bf16 %v3243_v45  ;;  %v3244_v47 = vunpack.i.l.bf16 %v3243_v45  ;;  %v3250_v48 = vunpack.i.h.bf16 %v3248_v44  ;;  %v3249_v49 = vunpack.i.l.bf16 %v3248_v44 }
 0x290   :  { %v3516_v50 = vpack.c.bf16 %v3245_v46, %v3245_v46  ;;  %v3518_v51 = vpack.c.bf16 %v3244_v47, %v3244_v47  ;;  %v3525_v55 = vpack.c.bf16 %v3250_v48, %v3250_v48  ;;  %v3527_v56 = vpack.c.bf16 %v3249_v49, %v3249_v49 }
 0x291   :  { %v3253_v52 = vpop.permute.xlu1 %3252  ;;  %v235_v53 = vpop.permute.xlu0 %234 }
 0x292   :  { %v240_v54 = vsel %vm186_vm2, %v235_v53, 0  ;;  %283 = vrot.lane.b32.xlu1 %v3518_v51, %s3414_s16  ;;  %332 = vrot.lane.b32.xlu0 %v3516_v50, %s3414_s16  ;;  %v3255_v57 = vunpack.i.h.bf16 %v3253_v52  ;;  %v3254_v58 = vunpack.i.l.bf16 %v3253_v52 }
 0x293   :  { %2973 = vmatpush3.bf16.xpose.msra.mxu0 %v240_v54 }
 0x294   :  { %2984 = vmatprep.subr.bf16.mxu0 %v3409_v15  ;;  %v3535_v61 = vpack.c.bf16 %v3255_v57, %v3255_v57  ;;  %v3537_v62 = vpack.c.bf16 %v3254_v58, %v3254_v58 }
 0x295   :  { %v185_v59 = vpop.permute.xlu1 %184 }
 0x296   :  { %381 = vrot.lane.b32.xlu1 %v3527_v56, %s3414_s16  ;;  %430 = vrot.lane.b32.xlu0 %v3525_v55, %s3414_s16  ;;  %v191_v60 = vsel %vm186_vm2, %v185_v59, 0 }
 0x297   :  { %2967 = vmatpush3.bf16.xpose.msra.mxu1 %v191_v60 }
 0x298   :  { %2978 = vmatprep.subr.bf16.mxu1 %v3409_v15 }
 0x29a   :  { %479 = vrot.lane.b32.xlu1 %v3537_v62, %s3414_s16  ;;  %528 = vrot.lane.b32.xlu0 %v3535_v61, %s3414_s16 }
 0x29b   :  { %2975 = vmatmul.mubr.msk.bf16.vlgmr.msra.gmra.mrb[4].mxu0 %vm186_vm2, %v3510_v42 }
 0x29c   :  { %2986 = vmatprep.mubr.msk.bf16.mxu0 %vm3410_vm1, %v3409_v15 }
 0x29e   :  { %2969 = vmatmul.mubr.msk.bf16.vlgmr.msra.gmra.mrb[0].mxu1 %vm186_vm2, %v163_v43  ;;  %672 = vrot.lane.b32.xlu1 %v163_v43, %s3415_s17 }
 0x29f   :  { %2980 = vmatprep.mubr.msk.bf16.mxu1 %vm3410_vm1, %v3409_v15 }
 0x304   :  { %v284_v63 = vpop.permute.xlu1 %283  ;;  %v333_v0 = vpop.permute.xlu0 %332 }
 0x305   :  { %v289_v1 = vsel %vm186_vm2, %v284_v63, 0  ;;  %v338_v2 = vsel %vm186_vm2, %v333_v0, 0 }
 0x306   :  { %2979 = vmatpush3.bf16.xpose.msra.mxu1 %v289_v1  ;;  %2985 = vmatpush3.bf16.xpose.msra.mxu0 %v338_v2 }
 0x307   :  { %2990 = vmatprep.subr.bf16.mxu1 %v3409_v15  ;;  %2996 = vmatprep.subr.bf16.mxu0 %v3409_v15 }
 0x308   :  { %v382_v3 = vpop.permute.xlu1 %381  ;;  %v431_v4 = vpop.permute.xlu0 %430 }
 0x309   :  { %v387_v5 = vsel %vm186_vm2, %v382_v3, 0  ;;  %v436_v6 = vsel %vm186_vm2, %v431_v4, 0 }
 0x30c   :  { %v480_v7 = vpop.permute.xlu1 %479  ;;  %v529_v8 = vpop.permute.xlu0 %528 }
 0x30d   :  { %2981 = vmatmul.mubr.msk.bf16.vlgmr.msra.gmra.mrb[4].mxu1 %vm186_vm2, %v3518_v51  ;;  %2987 = vmatmul.mubr.msk.bf16.vlgmr.msra.gmra.mrb[8].mxu0 %vm186_vm2, %v3516_v50  ;;  %v485_v9 = vsel %vm186_vm2, %v480_v7, 0  ;;  %v534_v10 = vsel %vm186_vm2, %v529_v8, 0 }
 0x30e   :  { %2991 = vmatpush3.bf16.xpose.msra.mxu1 %v387_v5  ;;  %2997 = vmatpush3.bf16.xpose.msra.mxu0 %v436_v6 }
 0x30f   :  { %2992 = vmatprep.mubr.msk.bf16.mxu1 %vm3410_vm1, %v3409_v15  ;;  %2998 = vmatprep.mubr.msk.bf16.mxu0 %vm3410_vm1, %v3409_v15 }
 0x310   :  { %3002 = vmatprep.subr.bf16.mxu1 %v3409_v15  ;;  %3008 = vmatprep.subr.bf16.mxu0 %v3409_v15  ;;  %v673_v11 = vpop.permute.xlu1 %672 }
 0x311   :  { %v679_v12 = vsel %vm677_vm3, %v673_v11, 0 }
 0x315   :  { %2993 = vmatmul.mubr.msk.bf16.vlgmr.msra.gmra.mrb[8].mxu1 %vm186_vm2, %v3527_v56  ;;  %2999 = vmatmul.mubr.msk.bf16.vlgmr.msra.gmra.mrb[12].mxu0 %vm186_vm2, %v3525_v55 }
 0x316   :  { %3003 = vmatpush3.bf16.xpose.msra.mxu1 %v485_v9  ;;  %3009 = vmatpush3.bf16.xpose.msra.mxu0 %v534_v10 }
 0x317   :  { %3004 = vmatprep.mubr.msk.bf16.mxu1 %vm3410_vm1, %v3409_v15  ;;  %3010 = vmatprep.mubr.msk.bf16.mxu0 %vm3410_vm1, %v3409_v15 }
 0x318   :  { %3014 = vmatprep.subr.bf16.mxu1 %v3409_v15  ;;  %3020 = vmatprep.subr.bf16.mxu0 %v3409_v15 }
 0x31d   :  { %3005 = vmatmul.mubr.msk.bf16.vlgmr.msra.gmra.mrb[12].mxu1 %vm186_vm2, %v3537_v62  ;;  %3011 = vmatmul.mubr.msk.bf16.vlgmr.msra.gmra.mrb[16].mxu0 %vm186_vm2, %v3535_v61 }
 0x31e   :  { %3015 = vmatpush3.bf16.msra.mxu1 %v679_v12  ;;  %3022 = vmatprep.mubr.msk.bf16.mxu0 %vm3410_vm1, %v3409_v15 }
 0x31f   :  { %3016 = vmatprep.mubr.msk.bf16.mxu1 %vm3410_vm1, %v3409_v15  ;;  %3026 = vmatprep.subr.bf16.mxu1 %v3409_v15 }
 0x36e   :  { %v276_v26 = vpop.f32.mrb[4].mxu0 }
 0x36f   :  { %v277_v28 = vadd.f32 %v276_v26, %v3596_v25  ;;  %v2976_v29 = vpop.f32.mrb[5].mxu0 }
 0x370   :  { %v279_v30 = vpop.f32.mrb[6].mxu0 }
 0x371   :  { %v2977_v33 = vpop.f32.mrb[7].mxu0  ;;  %v227_v34 = vpop.f32.mrb[0].mxu1  ;;  %v579_v35 = vsel %vm186_vm2, %v277_v28, -inf }
 0x372   :  { %v228_v36 = vadd.f32 %v227_v34, %v3598_v27  ;;  %580 = vmax.xlane.f32.xlu0 %v579_v35  ;;  %v2970_v37 = vpop.f32.mrb[1].mxu1 }
 0x373   :  { %v230_v38 = vpop.f32.mrb[2].mxu1 }
 0x374   :  { %v2971_v39 = vpop.f32.mrb[3].mxu1  ;;  %v576_v40 = vsel %vm186_vm2, %v228_v36, -inf }
 0x375   :  { %577 = vmax.xlane.f32.xlu1 %v576_v40 }
 0x3e0   :  { %v325_v41 = vpop.f32.mrb[4].mxu1  ;;  %v374_v43 = vpop.f32.mrb[8].mxu0 }
 0x3e1   :  { %v326_v44 = vadd.f32 %v325_v41, %v3598_v27  ;;  %v2982_v45 = vpop.f32.mrb[5].mxu1  ;;  %v2988_v46 = vpop.f32.mrb[9].mxu0  ;;  %v375_v49 = vadd.f32 %v374_v43, %v3596_v25 }
 0x3e2   :  { %v328_v47 = vpop.f32.mrb[6].mxu1  ;;  %v377_v48 = vpop.f32.mrb[10].mxu0 }
 0x3e3   :  { %v2983_v52 = vpop.f32.mrb[7].mxu1  ;;  %v2989_v53 = vpop.f32.mrb[11].mxu0  ;;  %v582_v54 = vsel %vm186_vm2, %v326_v44, -inf  ;;  %v585_v57 = vsel %vm186_vm2, %v375_v49, -inf }
 0x3e4   :  { %583 = vmax.xlane.f32.xlu0 %v582_v54 }
 0x3e8   :  { %v423_v58 = vpop.f32.mrb[8].mxu1  ;;  %586 = vmax.xlane.f32.xlu0 %v585_v57  ;;  %v472_v59 = vpop.f32.mrb[12].mxu0 }
 0x3e9   :  { %v424_v60 = vadd.f32 %v423_v58, %v3598_v27  ;;  %v3610_v63 = vadd.f32 %v472_v59, %v3596_v25  ;;  %v2994_v0 = vpop.f32.mrb[9].mxu1  ;;  %v3000_v1 = vpop.f32.mrb[13].mxu0 }
 0x3ea   :  { %v426_v2 = vpop.f32.mrb[10].mxu1  ;;  %v475_v3 = vpop.f32.mrb[14].mxu0 }
 0x3eb   :  { %v2995_v4 = vpop.f32.mrb[11].mxu1  ;;  %v3001_v5 = vpop.f32.mrb[15].mxu0  ;;  %v588_v6 = vsel %vm186_vm2, %v424_v60, -inf  ;;  %v591_v7 = vsel %vm186_vm2, %v3610_v63, -inf }
 0x3ec   :  { %589 = vmax.xlane.f32.xlu1 %v588_v6  ;;  %592 = vmax.xlane.f32.xlu0 %v591_v7 }
 0x3f0   :  { %v521_v8 = vpop.f32.mrb[12].mxu1  ;;  %v570_v9 = vpop.f32.mrb[16].mxu0 }
 0x3f1   :  { %v522_v10 = vadd.f32 %v521_v8, %v3598_v27  ;;  %v3617_v11 = vadd.f32 %v570_v9, %v3596_v25  ;;  %v3006_v12 = vpop.f32.mrb[13].mxu1  ;;  %v3012_v13 = vpop.f32.mrb[17].mxu0 }
 0x3f2   :  { %v524_v17 = vpop.f32.mrb[14].mxu1  ;;  %v573_v18 = vpop.f32.mrb[18].mxu0 }
 0x3f3   :  { %v3007_v19 = vpop.f32.mrb[15].mxu1  ;;  %v3013_v20 = vpop.f32.mrb[19].mxu0  ;;  %v594_v21 = vsel %vm186_vm2, %v522_v10, -inf  ;;  %v597_v22 = vsel %vm186_vm2, %v3617_v11, -inf }
 0x3f4   :  { %595 = vmax.xlane.f32.xlu1 %v594_v21  ;;  %598 = vmax.xlane.f32.xlu0 %v597_v22 }
 0x3ff   :  { %v581_v23 = vpop.xlane.xlu0 %580 }
 0x400   :  { %v601_v24 = vsub.f32 %v277_v28, %v581_v23 }
 0x402   :  { %v578_v26 = vpop.xlane.xlu1 %577  ;;  %v610_v29 = vmul.f32 1.442695, %v601_v24 }
 0x403   :  { %v600_v30 = vsub.f32 %v228_v36, %v578_v26 }
 0x404   :  { %3321 = vpow2.f32 %v610_v29 }
 0x405   :  { %769 = vrot.lane.b32.xlu1 %v3518_v51, %s3415_s17  ;;  %v608_v33 = vmul.f32 1.442695, %v600_v30 }
 0x407   :  { %3323 = vpow2.f32 %v608_v33 }
 0x409   :  { %817 = vrot.lane.b32.xlu1 %v3516_v50, %s3415_s17 }
 0x40a   :  { %721 = vrot.lane.b32.xlu0 %v3510_v42, %s3415_s17 }
 0x40e   :  { %v3322_v34 = vpop.eup %3321 }
 0x40f   :  { %v627_v35 = vsel %vm186_vm2, %v3322_v34, 0.0 }
 0x411   :  { %v3629_v37 = vpop.eup %3323 }
 0x412   :  { %v624_v50 = vsel %vm186_vm2, %v3629_v37, 0.0 }
 0x429   :  { %628 = vadd.xlane.f32.xlu0 %v627_v35 }
 0x42d   :  { %625 = vadd.xlane.f32.xlu1 %v624_v50 }
 0x43e   :  { %865 = vrot.lane.b32.xlu1 %v3527_v56, %s3415_s17 }
 0x471   :  { %v584_v42 = vpop.xlane.xlu0 %583 }
 0x472   :  { %v602_v51 = vsub.f32 %v326_v44, %v584_v42 }
 0x474   :  { %v612_v28 = vmul.f32 1.442695, %v602_v51 }
 0x475   :  { %v587_v36 = vpop.xlane.xlu0 %586 }
 0x476   :  { %3325 = vpow2.f32 %v612_v28  ;;  %v603_v38 = vsub.f32 %v375_v49, %v587_v36 }
 0x478   :  { %v614_v39 = vmul.f32 1.442695, %v603_v38 }
 0x479   :  { %v590_v40 = vpop.xlane.xlu1 %589  ;;  %v593_v45 = vpop.xlane.xlu0 %592 }
 0x47a   :  { %3327 = vpow2.f32 %v614_v39  ;;  %v604_v41 = vsub.f32 %v424_v60, %v590_v40  ;;  %v605_v1 = vsub.f32 %v3610_v63, %v593_v45 }
 0x47c   :  { %v616_v43 = vmul.f32 1.442695, %v604_v41  ;;  %v618_v2 = vmul.f32 1.442695, %v605_v1 }
 0x47e   :  { %3329 = vpow2.f32 %v616_v43 }
 0x480   :  { %v3635_v46 = vpop.eup %3325 }
 0x481   :  { %v596_v47 = vpop.xlane.xlu1 %595  ;;  %v599_v48 = vpop.xlane.xlu0 %598  ;;  %v630_v56 = vsel %vm186_vm2, %v3635_v46, 0.0 }
 0x482   :  { %v606_v52 = vsub.f32 %v522_v10, %v596_v47  ;;  %631 = vadd.xlane.f32.xlu1 %v630_v56  ;;  %v607_v3 = vsub.f32 %v3617_v11, %v599_v48 }
 0x484   :  { %v3639_v44 = vpop.eup %3327  ;;  %v620_v53 = vmul.f32 1.442695, %v606_v52  ;;  %v622_v4 = vmul.f32 1.442695, %v607_v3 }
 0x485   :  { %v722_v49 = vpop.permute.xlu0 %721  ;;  %v633_v54 = vsel %vm186_vm2, %v3639_v44, 0.0  ;;  %v770_v5 = vpop.permute.xlu1 %769 }
 0x486   :  { %3331 = vpow2.f32 %v620_v53  ;;  %v727_v57 = vsel %vm677_vm3, %v722_v49, 0  ;;  %634 = vadd.xlane.f32.xlu0 %v633_v54  ;;  %v775_v20 = vsel %vm677_vm3, %v770_v5, 0 }
 0x487   :  { %3021 = vmatpush3.bf16.msra.mxu0 %v727_v57  ;;  %3333 = vpow2.f32 %v618_v2 }
 0x488   :  { %v3644_v58 = vpop.eup %3329  ;;  %3032 = vmatprep.subr.bf16.mxu0 %v3409_v15  ;;  %3335 = vpow2.f32 %v622_v4 }
 0x489   :  { %v636_v59 = vsel %vm186_vm2, %v3644_v58, 0.0  ;;  %v818_v6 = vpop.permute.xlu1 %817 }
 0x48a   :  { %637 = vadd.xlane.f32.xlu1 %v636_v59  ;;  %v823_v17 = vsel %vm677_vm3, %v818_v6, 0 }
 0x490   :  { %v3649_v60 = vpop.eup %3331 }
 0x491   :  { %v642_v0 = vsel %vm186_vm2, %v3649_v60, 0.0  ;;  %v3659_v8 = vpop.eup %3333 }
 0x492   :  { %643 = vadd.xlane.f32.xlu1 %v642_v0  ;;  %v3663_v10 = vpop.eup %3335 }
 0x49c   :  { %913 = vrot.lane.b32.xlu0 %v3525_v55, %s3415_s17  ;;  %v639_v55 = vsel %vm186_vm2, %v3659_v8, 0.0 }
 0x4a3   :  { %961 = vrot.lane.b32.xlu1 %v3537_v62, %s3415_s17  ;;  %v645_v62 = vsel %vm186_vm2, %v3663_v10, 0.0 }
 0x4a7   :  { %1095 = vrot.lane.b32.xlu1 %v3473_v14, %s3416_s1 }
 0x4b6   :  { %v629_v7 = vpop.xlane.xlu0 %628 }
 0x4b7   :  { %3337 = vrcp.f32 %v629_v7 }
 0x4ba   :  { %v626_v9 = vpop.xlane.xlu1 %625 }
 0x4bb   :  { %3339 = vrcp.f32 %v626_v9  ;;  %640 = vadd.xlane.f32.xlu0 %v639_v55 }
 0x4be   :  { %v866_v21 = vpop.permute.xlu1 %865 }
 0x4bf   :  { %646 = vadd.xlane.f32.xlu0 %v645_v62 }
 0x4c1   :  { %v3338_v63 = vpop.eup %3337 }
 0x4c2   :  { %v657_v11 = vmul.f32 %v3338_v63, %v3322_v34  ;;  %v871_v34 = vsel %vm677_vm3, %v866_v21, 0 }
 0x4c4   :  { %v665_v12 = vpack.c.bf16 %v657_v11, %v657_v11 }
 0x4c5   :  { %v3340_v13 = vpop.eup %3339 }
 0x4c6   :  { %v656_v18 = vmul.f32 %v3340_v13, %v3629_v37  ;;  %3023 = vmatmul.mubr.msk.bf16.vlgmr.msra.gmra.mrb[20].mxu0 %vm186_vm2, %v665_v12 }
 0x4c7   :  { %3033 = vmatpush3.bf16.msra.mxu0 %v823_v17  ;;  %3034 = vmatprep.mubr.msk.bf16.mxu0 %vm3410_vm1, %v3409_v15 }
 0x4c8   :  { %v664_v19 = vpack.c.bf16 %v656_v18, %v656_v18  ;;  %3044 = vmatprep.subr.bf16.mxu0 %v3409_v15 }
 0x4ca   :  { %3017 = vmatmul.mubr.msk.bf16.vlgmr.msra.gmra.mrb[16].mxu1 %vm186_vm2, %v664_v19 }
 0x4cb   :  { %3027 = vmatpush3.bf16.msra.mxu1 %v775_v20  ;;  %3028 = vmatprep.mubr.msk.bf16.mxu1 %vm3410_vm1, %v3409_v15 }
 0x4cc   :  { %3038 = vmatprep.subr.bf16.mxu1 %v3409_v15 }
 0x4d5   :  { %1009 = vrot.lane.b32.xlu0 %v3535_v61, %s3415_s17 }
 0x50f   :  { %v632_v22 = vpop.xlane.xlu1 %631 }
 0x510   :  { %3341 = vrcp.f32 %v632_v22 }
 0x513   :  { %v635_v23 = vpop.xlane.xlu0 %634 }
 0x514   :  { %3343 = vrcp.f32 %v635_v23 }
 0x517   :  { %v638_v24 = vpop.xlane.xlu1 %637  ;;  %v914_v61 = vpop.permute.xlu0 %913 }
 0x518   :  { %3345 = vrcp.f32 %v638_v24  ;;  %v919_v28 = vsel %vm677_vm3, %v914_v61, 0 }
 0x51a   :  { %v3342_v26 = vpop.eup %3341 }
 0x51b   :  { %v658_v29 = vmul.f32 %v3342_v26, %v3635_v46 }
 0x51d   :  { %v666_v30 = vpack.c.bf16 %v658_v29, %v658_v29 }
 0x51e   :  { %v3344_v33 = vpop.eup %3343 }
 0x51f   :  { %v659_v35 = vmul.f32 %v3344_v33, %v3639_v44  ;;  %3029 = vmatmul.mubr.msk.bf16.vlgmr.msra.gmra.mrb[20].mxu1 %vm186_vm2, %v666_v30  ;;  %v644_v37 = vpop.xlane.xlu1 %643 }
 0x520   :  { %3039 = vmatpush3.bf16.msra.mxu1 %v871_v34  ;;  %3347 = vrcp.f32 %v644_v37  ;;  %3040 = vmatprep.mubr.msk.bf16.mxu1 %vm3410_vm1, %v3409_v15 }
 0x521   :  { %v667_v50 = vpack.c.bf16 %v659_v35, %v659_v35  ;;  %3050 = vmatprep.subr.bf16.mxu1 %v3409_v15 }
 0x522   :  { %v3346_v42 = vpop.eup %3345 }
 0x523   :  { %v660_v51 = vmul.f32 %v3346_v42, %v3644_v58  ;;  %3035 = vmatmul.mubr.msk.bf16.vlgmr.msra.gmra.mrb[24].mxu0 %vm186_vm2, %v667_v50  ;;  %v962_v36 = vpop.permute.xlu1 %961 }
 0x524   :  { %3045 = vmatpush3.bf16.msra.mxu0 %v919_v28  ;;  %3046 = vmatprep.mubr.msk.bf16.mxu0 %vm3410_vm1, %v3409_v15  ;;  %v967_v39 = vsel %vm677_vm3, %v962_v36, 0 }
 0x525   :  { %v668_v38 = vpack.c.bf16 %v660_v51, %v660_v51  ;;  %3056 = vmatprep.subr.bf16.mxu0 %v3409_v15 }
 0x527   :  { %3041 = vmatmul.mubr.msk.bf16.vlgmr.msra.gmra.mrb[24].mxu1 %vm186_vm2, %v668_v38  ;;  %v1096_v62 = vpop.permute.xlu1 %1095 }
 0x528   :  { %3051 = vmatpush3.bf16.msra.mxu1 %v967_v39  ;;  %3052 = vmatprep.mubr.msk.bf16.mxu1 %vm3410_vm1, %v3409_v15 }
 0x529   :  { %3062 = vmatprep.subr.bf16.mxu1 %v3409_v15 }
 0x52a   :  { %v3348_v40 = vpop.eup %3347 }
 0x52b   :  { %v662_v41 = vmul.f32 %v3348_v40, %v3649_v60 }
 0x52d   :  { %v670_v43 = vpack.c.bf16 %v662_v41, %v662_v41 }
 0x52f   :  { %3053 = vmatmul.mubr.msk.bf16.vlgmr.msra.gmra.mrb[28].mxu1 %vm186_vm2, %v670_v43 }
 0x530   :  { %3066 = vmatprep.mubr.msk.bf16.mxu1 %vm3410_vm1, %v3409_v15  ;;  %3063 = vmatpush3.bf16.msra.mxu1 %v1096_v62 }
 0x531   :  { %3064 = vmatprep.subr.bf16.mxu1 %v3409_v15 }
 0x548   :  { %v641_v45 = vpop.xlane.xlu0 %640 }
 0x549   :  { %3349 = vrcp.f32 %v641_v45 }
 0x54c   :  { %v647_v46 = vpop.xlane.xlu0 %646 }
 0x54d   :  { %3351 = vrcp.f32 %v647_v46 }
 0x550   :  { %v1010_v56 = vpop.permute.xlu0 %1009 }
 0x551   :  { %v1015_v53 = vsel %vm677_vm3, %v1010_v56, 0  ;;  %v2785_v56 = vld [vmem:[%s4119_s5 + $0x2] ss:$0 sm:$0xff] }
 0x553   :  { %v3350_v47 = vpop.eup %3349 }
 0x554   :  { %v661_v48 = vmul.f32 %v3350_v47, %v3659_v8 }
 0x556   :  { %v669_v52 = vpack.c.bf16 %v661_v48, %v661_v48 }
 0x557   :  { %v3352_v44 = vpop.eup %3351 }
 0x558   :  { %3047 = vmatmul.mubr.msk.bf16.vlgmr.msra.gmra.mrb[28].mxu0 %vm186_vm2, %v669_v52  ;;  %v663_v49 = vmul.f32 %v3352_v44, %v3663_v10 }
 0x559   :  { %3057 = vmatpush3.bf16.msra.mxu0 %v1015_v53  ;;  %3058 = vmatprep.mubr.msk.bf16.mxu0 %vm3410_vm1, %v3409_v15 }
 0x55a   :  { %3070 = vmatprep.subr.bf16.mxu0 %v3409_v15  ;;  %v671_v54 = vpack.c.bf16 %v663_v49, %v663_v49 }
 0x560   :  { %3059 = vmatmul.mubr.msk.bf16.vlgmr.msra.gmra.mrb[32].mxu0 %vm186_vm2, %v671_v54 }
 0x561   :  { %3074 = vmatprep.mubr.msk.bf16.mxu0 %vm3410_vm1, %v3409_v15 }
 0x599   :  { %v763_v57 = vpop.f32.mrb[20].mxu0 }
 0x59a   :  { %v3024_v58 = vpop.f32.mrb[21].mxu0 }
 0x59b   :  { %v766_v59 = vpop.f32.mrb[22].mxu0 }
 0x59c   :  { %v3025_v60 = vpop.f32.mrb[23].mxu0 }
 0x59d   :  { %v715_v0 = vpop.f32.mrb[16].mxu1 }
 0x59e   :  { %v3018_v1 = vpop.f32.mrb[17].mxu1 }
 0x59f   :  { %v718_v2 = vpop.f32.mrb[18].mxu1 }
 0x5a0   :  { %v3019_v3 = vpop.f32.mrb[19].mxu1 }
 0x5f2   :  { %v811_v4 = vpop.f32.mrb[20].mxu1 }
 0x5f3   :  { %v3030_v5 = vpop.f32.mrb[21].mxu1 }
 0x5f4   :  { %v814_v6 = vpop.f32.mrb[22].mxu1 }
 0x5f5   :  { %v3031_v7 = vpop.f32.mrb[23].mxu1 }
 0x5f6   :  { %v859_v8 = vpop.f32.mrb[24].mxu0 }
 0x5f7   :  { %v3256_v9 = vpack.i.bf16 %v859_v8, %v811_v4  ;;  %v3036_v55 = vpop.f32.mrb[25].mxu0 }
 0x5f8   :  { %v862_v10 = vpop.f32.mrb[26].mxu0  ;;  %v3304_v55 = vld [vmem:[%s4121_s4 + $0x8] sm:$0xff]  }
 0x5f9   :  { %3257 = vrot.lane.b32.xlu0 %v3256_v9, %s3417_s22  ;;  %v3037_v14 = vpop.f32.mrb[27].mxu0 }
 0x5fa   :  { %v907_v63 = vpop.f32.mrb[24].mxu1 }
 0x5fb   :  { %v3042_v11 = vpop.f32.mrb[25].mxu1 }
 0x5fc   :  { %v910_v12 = vpop.f32.mrb[26].mxu1 }
 0x5fd   :  { %v3043_v13 = vpop.f32.mrb[27].mxu1 }
 0x602   :  { %v1003_v17 = vpop.f32.mrb[28].mxu1 }
 0x603   :  { %v3054_v18 = vpop.f32.mrb[29].mxu1 }
 0x604   :  { %v1006_v19 = vpop.f32.mrb[30].mxu1  ;;  %v2787_v18 = vld [vmem:[%s4119_s5 + $0x3] ss:$0 sm:$0xff] }
 0x605   :  { %v3055_v20 = vpop.f32.mrb[31].mxu1 }
 0x62b   :  { %v955_v21 = vpop.f32.mrb[28].mxu0 }
 0x62c   :  { %v3261_v22 = vpack.i.bf16 %v955_v21, %v907_v63  ;;  %v3048_v23 = vpop.f32.mrb[29].mxu0 }
 0x62d   :  { %v958_v24 = vpop.f32.mrb[30].mxu0 }
 0x62e   :  { %3262 = vrot.lane.b32.xlu1 %v3261_v22, %s3418_s23  ;;  %v3049_v26 = vpop.f32.mrb[31].mxu0  ;;  %v2788_v22 = vld [vmem:[%s4119_s5 + $0x4] ss:$0 sm:$0xff] }
 0x632   :  { %1097 = vrot.lane.b32.xlu1 %v3481_v16, %s3416_s1 }
 0x633   :  { %v1051_v29 = vpop.f32.mrb[32].mxu0 }
 0x634   :  { %v3266_v30 = vpack.i.bf16 %v1051_v29, %v1003_v17  ;;  %v3060_v33 = vpop.f32.mrb[33].mxu0 }
 0x635   :  { %v1054_v34 = vpop.f32.mrb[34].mxu0  ;;  %v3306_v33 = vld [vmem:[%s4121_s4 + $0x18] sm:$0xff]  }
 0x636   :  { %3267 = vrot.lane.b32.xlu0 %v3266_v30, %s3419_s24  ;;  %v3061_v35 = vpop.f32.mrb[35].mxu0  ;;  %v3305_v30 = vld [vmem:[%s4121_s4 + $0x10] sm:$0xff]   ;;  %v3307_v34 = vld [vmem:[%s4121_s4 + $0x20] sm:$0xff]  }
 0x637   :  { %v3308_v35 = vld [vmem:[%s4121_s4 + $0x28] sm:$0xff]  }
 0x66b   :  { %v3258_v61 = vpop.permute.xlu0 %3257 }
 0x66c   :  { %v3260_v42 = vunpack.i.h.bf16 %v3258_v61  ;;  %v3259_v51 = vunpack.i.l.bf16 %v3258_v61 }
 0x66e   :  { %v1082_v38 = vsel %vm186_vm2, %v763_v57, %v3260_v42  ;;  %v1081_v39 = vsel %vm186_vm2, %v715_v0, %v3259_v51 }
 0x6a0   :  { %v3263_v37 = vpop.permute.xlu1 %3262 }
 0x6a1   :  { %v3265_v28 = vunpack.i.h.bf16 %v3263_v37  ;;  %v3264_v36 = vunpack.i.l.bf16 %v3263_v37  ;;  %v2789_v37 = vld [vmem:[%s4119_s5 + $0x1] ss:$0 sm:$0xff] }
 0x6a3   :  { %v1085_v43 = vsel %vm1083_vm4, %v1082_v38, %v3265_v28  ;;  %v1084_v45 = vsel %vm1083_vm4, %v1081_v39, %v3264_v36 }
 0x6a4   :  { %v1098_v50 = vpop.permute.xlu1 %1097 }
 0x6a5   :  { %3065 = vmatpush3.bf16.msra.mxu1 %v1098_v50 }
 0x6a6   :  { %3078 = vmatprep.subr.bf16.mxu1 %v3409_v15 }
 0x6a8   :  { %v3268_v16 = vpop.permute.xlu0 %3267 }
 0x6a9   :  { %v3270_v40 = vunpack.i.h.bf16 %v3268_v16  ;;  %v3269_v41 = vunpack.i.l.bf16 %v3268_v16 }
 0x6ab   :  { %v1088_v46 = vsel %vm1086_vm5, %v1085_v43, %v3270_v40  ;;  %v1087_v47 = vsel %vm1086_vm5, %v1084_v45, %v3269_v41 }
 0x6ac   :  { %v1089_v48 = vpack.c.bf16 %v1088_v46, %v1087_v47 }
 0x6ae   :  { %3067 = vmatmul.mubr.msk.bf16.vlgmr.msra.gmra.mrb[32].mxu1 %vm37_vm0, %v1089_v48 }
 0x6af   :  { %3086 = vmatprep.mubr.msk.bf16.mxu1 %vm3410_vm1, %v3409_v15  ;;  %3079 = vmatpush3.bf16.msra.mxu1 %v3305_v30 }
 0x6b0   :  { %3080 = vmatprep.subr.bf16.mxu1 %v3409_v15 }
 0x6b3   :  { %3081 = vmatpush3.bf16.msra.mxu1 %v3306_v33 }
 0x6b4   :  { %3082 = vmatprep.subr.bf16.mxu1 %v3409_v15 }
 0x6b7   :  { %3083 = vmatpush3.bf16.msra.mxu1 %v3307_v34 }
 0x6b8   :  { %3084 = vmatprep.subr.bf16.mxu1 %v3409_v15 }
 0x6bb   :  { %3085 = vmatpush3.bf16.msra.mxu1 %v3308_v35 }
 0x6bc   :  { %3104 = vmatprep.subr.bf16.mxu1 %v3409_v15 }
 0x781   :  { %v1138_v52 = vpop.f32.mrb[32].mxu1 }
 0x782   :  { %v1139_v44 = vadd.f32 %v2785_v56, %v1138_v52  ;;  %v3068_v53 = vpop.f32.mrb[33].mxu1 }
 0x783   :  { %v1141_v49 = vpop.f32.mrb[34].mxu1 }
 0x784   :  { %v1142_v54 = vadd.f32 %v2785_v56, %v1141_v49  ;;  %v3069_v57 = vpop.f32.mrb[35].mxu1  ;;  %v1145_v58 = vadd.f32 %v1139_v44, %v3496_v31 }
 0x786   :  { %v1149_v59 = vsel %vm37_vm0, %v1145_v58, 0.0  ;;  %v1146_v60 = vadd.f32 %v1142_v54, %v3498_v32  ;;  %v3303_v32 = vld [vmem:[%s4121_s4] sm:$0xff]  }
 0x787   :  { %1150 = vadd.xlane.f32.xlu0 %v1149_v59  ;;  %3071 = vmatpush3.bf16.msra.mxu0 %v3303_v32 }
 0x788   :  { %v1152_v0 = vsel %vm37_vm0, %v1146_v60, 0.0  ;;  %3072 = vmatprep.subr.bf16.mxu0 %v3409_v15 }
 0x789   :  { %1153 = vadd.xlane.f32.xlu1 %v1152_v0 }
 0x78b   :  { %3073 = vmatpush3.bf16.msra.mxu0 %v3304_v55 }
 0x78c   :  { %3090 = vmatprep.subr.bf16.mxu0 %v3409_v15 }
 0x814   :  { %v1151_v1 = vpop.xlane.xlu0 %1150 }
 0x815   :  { %v1155_v2 = vmul.f32 0.03125, %v1151_v1 }
 0x816   :  { %v1154_v3 = vpop.xlane.xlu1 %1153 }
 0x817   :  { %v1157_v4 = vsub.f32 %v1145_v58, %v1155_v2  ;;  %v1156_v5 = vmul.f32 0.03125, %v1154_v3 }
 0x819   :  { %v1158_v6 = vsub.f32 %v1146_v60, %v1156_v5  ;;  %v1159_v7 = vmul.f32 %v1157_v4, %v1157_v4  ;;  %v2793_v60 = vld [vmem:[%s4119_s5 + $0x5] ss:$0 sm:$0xff] }
 0x81b   :  { %v1161_v8 = vsel %vm37_vm0, %v1159_v7, 0.0  ;;  %v1160_v9 = vmul.f32 %v1158_v6, %v1158_v6 }
 0x81c   :  { %1162 = vadd.xlane.f32.xlu0 %v1161_v8 }
 0x81d   :  { %v1164_v31 = vsel %vm37_vm0, %v1160_v9, 0.0 }
 0x820   :  { %1165 = vadd.xlane.f32.xlu0 %v1164_v31 }
 0x8a9   :  { %v1163_v10 = vpop.xlane.xlu0 %1162 }
 0x8aa   :  { %v1167_v62 = vmul.f32 0.03125, %v1163_v10 }
 0x8ac   :  { %v1169_v14 = vadd.f32 1e-12, %v1167_v62 }
 0x8ad   :  { %v1166_v63 = vpop.xlane.xlu0 %1165 }
 0x8ae   :  { %3353 = vrsqrt.f32 %v1169_v14  ;;  %v1168_v11 = vmul.f32 0.03125, %v1166_v63 }
 0x8b0   :  { %v1170_v12 = vadd.f32 1e-12, %v1168_v11 }
 0x8b2   :  { %3355 = vrsqrt.f32 %v1170_v12 }
 0x8b8   :  { %v3354_v13 = vpop.eup %3353 }
 0x8b9   :  { %v1173_v17 = vmul.f32 %v3354_v13, %v1157_v4 }
 0x8bb   :  { %v1179_v20 = vmul.f32 %v2787_v18, %v1173_v17  ;;  %v3788_v17 = vld [vmem:[%s4117_s3 + $0x10] sm:$0xff]  }
 0x8bc   :  { %v3356_v19 = vpop.eup %3355 }
 0x8bd   :  { %v1174_v21 = vmul.f32 %v3356_v19, %v1158_v6  ;;  %v1185_v24 = vadd.f32 %v2788_v22, %v1179_v20 }
 0x8bf   :  { %v1180_v23 = vmul.f32 %v2787_v18, %v1174_v21  ;;  %v3794_v18 = vld [vmem:[%s4117_s3 + $0x18] sm:$0xff]  }
 0x8c1   :  { %v1186_v26 = vadd.f32 %v2788_v22, %v1180_v23 }
 0x8c3   :  { %v1199_v29 = vpack.c.bf16 %v1186_v26, %v1185_v24 }
 0x8c5   :  { %3075 = vmatmul.mubr.msk.bf16.vlgmr.msra.gmra.mrb[36].mxu0 %vm37_vm0, %v1199_v29  ;;  %v2799_v29 = vld [vmem:[%s4119_s5 + $0x6] ss:$0 sm:$0xff] }
 0x8c6   :  { %3094 = vmatprep.mubr.msk.bf16.mxu0 %vm3410_vm1, %v3409_v15  ;;  %3091 = vmatpush3.bf16.msra.mxu0 %v3788_v17 }
 0x8c7   :  { %3092 = vmatprep.subr.bf16.mxu0 %v3409_v15 }
 0x8ca   :  { %3093 = vmatpush3.bf16.msra.mxu0 %v3794_v18 }
 0x8cb   :  { %3098 = vmatprep.subr.bf16.mxu0 %v3409_v15 }
 0x998   :  { %v1254_v61 = vpop.f32.mrb[36].mxu0 }
 0x999   :  { %v1255_v50 = vadd.f32 %v2789_v37, %v1254_v61  ;;  %v3076_v42 = vpop.f32.mrb[37].mxu0 }
 0x99a   :  { %v1257_v51 = vpop.f32.mrb[38].mxu0 }
 0x99b   :  { %v1261_v28 = vmul.f32 %v1255_v50, %v1255_v50  ;;  %v1258_v36 = vadd.f32 %v2789_v37, %v1257_v51  ;;  %v3077_v16 = vpop.f32.mrb[39].mxu0  ;;  %v2800_v37 = vld [vmem:[%s4119_s5 + $0x7] ss:$0 sm:$0xff] }
 0x99d   :  { %v1263_v38 = vmul.f32 %v1261_v28, %v1255_v50  ;;  %v1262_v39 = vmul.f32 %v1258_v36, %v1258_v36  ;;  %v2806_v28 = vld [vmem:[%s4119_s5 + $0x8] ss:$0 sm:$0xff] }
 0x99f   :  { %v1265_v40 = vmul.f32 0.044715, %v1263_v38  ;;  %v1264_v41 = vmul.f32 %v1262_v39, %v1258_v36 }
 0x9a1   :  { %v1267_v43 = vadd.f32 %v1265_v40, %v1255_v50  ;;  %v1266_v45 = vmul.f32 0.044715, %v1264_v41 }
 0x9a3   :  { %v1269_v46 = vmul.f32 0.7978846, %v1267_v43  ;;  %v1268_v47 = vadd.f32 %v1266_v45, %v1258_v36 }
 0x9a5   :  { %3357 = vtanh.f32 %v1269_v46  ;;  %v1270_v48 = vmul.f32 0.7978846, %v1268_v47 }
 0x9a7   :  { %3359 = vtanh.f32 %v1270_v48 }
 0x9af   :  { %v3358_v56 = vpop.eup %3357 }
 0x9b0   :  { %v1273_v52 = vadd.f32 1.0, %v3358_v56 }
 0x9b1   :  { %v3360_v44 = vpop.eup %3359 }
 0x9b2   :  { %v1275_v53 = vmul.f32 0.5, %v1273_v52  ;;  %v1274_v49 = vadd.f32 1.0, %v3360_v44 }
 0x9b4   :  { %v1276_v54 = vmul.f32 0.5, %v1274_v49  ;;  %v1277_v57 = vmul.f32 %v1275_v53, %v1255_v50 }
 0x9b6   :  { %v1278_v58 = vmul.f32 %v1276_v54, %v1258_v36 }
 0x9b8   :  { %v1279_v59 = vpack.c.bf16 %v1278_v58, %v1277_v57 }
 0x9ba   :  { %3087 = vmatmul.mubr.msk.bf16.vlgmr.msra.gmra.mrb[36].mxu1 %vm1309_vm6, %v1279_v59 }
 0x9bb   :  { %3106 = vmatprep.mubr.msk.bf16.mxu1 %vm3410_vm1, %v3409_v15 }
 0xa8d   :  { %v1347_v0 = vpop.f32.mrb[36].mxu1 }
 0xa8e   :  { %v1348_v1 = vadd.f32 %v2793_v60, %v1347_v0  ;;  %v3088_v2 = vpop.f32.mrb[37].mxu1 }
 0xa8f   :  { %v1350_v3 = vpop.f32.mrb[38].mxu1 }
 0xa90   :  { %v1351_v4 = vadd.f32 %v2793_v60, %v1350_v3  ;;  %v3089_v5 = vpop.f32.mrb[39].mxu1  ;;  %v1354_v6 = vadd.f32 %v1348_v1, %v1185_v24 }
 0xa92   :  { %v1358_v7 = vsel %vm37_vm0, %v1354_v6, 0.0  ;;  %v1355_v8 = vadd.f32 %v1351_v4, %v1186_v26 }
 0xa93   :  { %1359 = vadd.xlane.f32.xlu0 %v1358_v7 }
 0xa94   :  { %v1361_v9 = vsel %vm37_vm0, %v1355_v8, 0.0 }
 0xa95   :  { %1362 = vadd.xlane.f32.xlu1 %v1361_v9 }
 0xb20   :  { %v1360_v31 = vpop.xlane.xlu0 %1359 }
 0xb21   :  { %v1364_v32 = vmul.f32 0.03125, %v1360_v31 }
 0xb22   :  { %v1363_v55 = vpop.xlane.xlu1 %1362 }
 0xb23   :  { %v1366_v10 = vsub.f32 %v1354_v6, %v1364_v32  ;;  %v1365_v62 = vmul.f32 0.03125, %v1363_v55 }
 0xb25   :  { %v1367_v14 = vsub.f32 %v1355_v8, %v1365_v62  ;;  %v1368_v63 = vmul.f32 %v1366_v10, %v1366_v10 }
 0xb27   :  { %v1370_v11 = vsel %vm37_vm0, %v1368_v63, 0.0  ;;  %v1369_v12 = vmul.f32 %v1367_v14, %v1367_v14 }
 0xb28   :  { %1371 = vadd.xlane.f32.xlu0 %v1370_v11 }
 0xb29   :  { %v1373_v13 = vsel %vm37_vm0, %v1369_v12, 0.0 }
 0xb2a   :  { %1374 = vadd.xlane.f32.xlu1 %v1373_v13 }
 0xbb5   :  { %v1372_v19 = vpop.xlane.xlu0 %1371 }
 0xbb6   :  { %v1376_v20 = vmul.f32 0.03125, %v1372_v19 }
 0xbb7   :  { %v1375_v21 = vpop.xlane.xlu1 %1374 }
 0xbb8   :  { %v1378_v22 = vadd.f32 1e-12, %v1376_v20  ;;  %v1377_v23 = vmul.f32 0.03125, %v1375_v21 }
 0xbba   :  { %3361 = vrsqrt.f32 %v1378_v22  ;;  %v1379_v24 = vadd.f32 1e-12, %v1377_v23 }
 0xbbc   :  { %3363 = vrsqrt.f32 %v1379_v24 }
 0xbc4   :  { %v3362_v26 = vpop.eup %3361 }
 0xbc5   :  { %v1382_v30 = vmul.f32 %v3362_v26, %v1366_v10 }
 0xbc6   :  { %v3364_v33 = vpop.eup %3363 }
 0xbc7   :  { %v1388_v34 = vmul.f32 %v2799_v29, %v1382_v30  ;;  %v1383_v35 = vmul.f32 %v3364_v33, %v1367_v14 }
 0xbc9   :  { %v1389_v61 = vmul.f32 %v2799_v29, %v1383_v35  ;;  %v3805_v50 = vadd.f32 %v2800_v37, %v1388_v34 }
 0xbcb   :  { %v3807_v42 = vadd.f32 %v2800_v37, %v1389_v61 }
 0xbcd   :  { %v1401_v51 = vpack.c.bf16 %v3807_v42, %v3805_v50 }
 0xbcf   :  { %3095 = vmatmul.mubr.msk.bf16.vlgmr.msra.gmra.mrb[40].mxu0 %vm37_vm0, %v1401_v51 }
 0xbd0   :  { %3100 = vmatprep.mubr.msk.bf16.mxu0 %vm3410_vm1, %v3409_v15 }
 0xca2   :  { %v1457_v36 = vpop.f32.mrb[40].mxu0 }
 0xca3   :  { %v3096_v16 = vpop.f32.mrb[41].mxu0  ;;  %v1458_v39 = vadd.f32 %v2806_v28, %v1457_v36 }
 0xca4   :  { %v1460_v38 = vpop.f32.mrb[42].mxu0 }
 0xca5   :  { %v1461_v40 = vadd.f32 %v2806_v28, %v1460_v38  ;;  %v3097_v41 = vpop.f32.mrb[43].mxu0  ;;  %v1484_v46 = vpack.c.bf16 %v1458_v39, %v1458_v39 }
 0xca7   :  { %v3276_v43 = vpack.i.bf16 %v1461_v40, %v1458_v39  ;;  %v3819_v45 = vpack.c.bf16 %v1461_v40, %v1461_v40 }
 0xca9   :  { %3277 = vrot.lane.b32.xlu1 %v3276_v43, %s3411_s2  ;;  %3272 = vrot.lane.b32.xlu0 %v3276_v43, %s3412_s14 }
 0xcad   :  { %3282 = vrot.lane.b32.xlu1 %v3276_v43, %s3413_s15  ;;  %1542 = vrot.lane.b32.xlu0 %v3819_v45, %s3414_s16 }
 0xcb1   :  { %1493 = vrot.lane.b32.xlu1 %v1484_v46, %s3414_s16 }
 0xd1b   :  { %v3278_v47 = vpop.permute.xlu1 %3277  ;;  %v3273_v48 = vpop.permute.xlu0 %3272 }
 0xd1c   :  { %v3275_v56 = vunpack.i.h.bf16 %v3273_v48  ;;  %v3274_v52 = vunpack.i.l.bf16 %v3273_v48  ;;  %v3280_v44 = vunpack.i.h.bf16 %v3278_v47  ;;  %v3279_v53 = vunpack.i.l.bf16 %v3278_v47 }
 0xd1e   :  { %v3825_v49 = vpack.c.bf16 %v3275_v56, %v3275_v56  ;;  %v3827_v54 = vpack.c.bf16 %v3274_v52, %v3274_v52  ;;  %v3834_v60 = vpack.c.bf16 %v3280_v44, %v3280_v44  ;;  %v3836_v0 = vpack.c.bf16 %v3279_v53, %v3279_v53 }
 0xd1f   :  { %v3283_v57 = vpop.permute.xlu1 %3282  ;;  %v1543_v58 = vpop.permute.xlu0 %1542 }
 0xd20   :  { %v1548_v59 = vsel %vm186_vm2, %v1543_v58, 0  ;;  %1591 = vrot.lane.b32.xlu1 %v3827_v54, %s3414_s16  ;;  %1640 = vrot.lane.b32.xlu0 %v3825_v49, %s3414_s16  ;;  %v3285_v1 = vunpack.i.h.bf16 %v3283_v57  ;;  %v3284_v2 = vunpack.i.l.bf16 %v3283_v57 }
 0xd21   :  { %3105 = vmatpush3.bf16.xpose.msra.mxu1 %v1548_v59 }
 0xd22   :  { %3116 = vmatprep.subr.bf16.mxu1 %v3409_v15  ;;  %v3844_v5 = vpack.c.bf16 %v3285_v1, %v3285_v1  ;;  %v3846_v6 = vpack.c.bf16 %v3284_v2, %v3284_v2 }
 0xd23   :  { %v1494_v3 = vpop.permute.xlu1 %1493 }
 0xd24   :  { %v1499_v4 = vsel %vm186_vm2, %v1494_v3, 0  ;;  %1689 = vrot.lane.b32.xlu1 %v3836_v0, %s3414_s16  ;;  %1738 = vrot.lane.b32.xlu0 %v3834_v60, %s3414_s16 }
 0xd25   :  { %3099 = vmatpush3.bf16.xpose.msra.mxu0 %v1499_v4 }
 0xd26   :  { %3110 = vmatprep.subr.bf16.mxu0 %v3409_v15 }
 0xd28   :  { %1787 = vrot.lane.b32.xlu1 %v3846_v6, %s3414_s16  ;;  %1836 = vrot.lane.b32.xlu0 %v3844_v5, %s3414_s16 }
 0xd29   :  { %3107 = vmatmul.mubr.msk.bf16.vlgmr.msra.gmra.mrb[40].mxu1 %vm186_vm2, %v3819_v45 }
 0xd2a   :  { %3118 = vmatprep.mubr.msk.bf16.mxu1 %vm3410_vm1, %v3409_v15 }
 0xd2c   :  { %3101 = vmatmul.mubr.msk.bf16.vlgmr.msra.gmra.mrb[44].mxu0 %vm186_vm2, %v1484_v46  ;;  %1980 = vrot.lane.b32.xlu1 %v1484_v46, %s3415_s17 }
 0xd2d   :  { %3112 = vmatprep.mubr.msk.bf16.mxu0 %vm3410_vm1, %v3409_v15 }
 0xd92   :  { %v1592_v7 = vpop.permute.xlu1 %1591  ;;  %v1641_v8 = vpop.permute.xlu0 %1640 }
 0xd93   :  { %v1597_v9 = vsel %vm186_vm2, %v1592_v7, 0  ;;  %v1646_v31 = vsel %vm186_vm2, %v1641_v8, 0 }
 0xd94   :  { %3111 = vmatpush3.bf16.xpose.msra.mxu0 %v1597_v9  ;;  %3117 = vmatpush3.bf16.xpose.msra.mxu1 %v1646_v31 }
 0xd95   :  { %3122 = vmatprep.subr.bf16.mxu0 %v3409_v15  ;;  %3128 = vmatprep.subr.bf16.mxu1 %v3409_v15 }
 0xd96   :  { %v1690_v32 = vpop.permute.xlu1 %1689  ;;  %v1739_v55 = vpop.permute.xlu0 %1738 }
 0xd97   :  { %v1695_v10 = vsel %vm186_vm2, %v1690_v32, 0  ;;  %v1744_v62 = vsel %vm186_vm2, %v1739_v55, 0 }
 0xd9a   :  { %v1788_v14 = vpop.permute.xlu1 %1787  ;;  %v1837_v63 = vpop.permute.xlu0 %1836 }
 0xd9b   :  { %3113 = vmatmul.mubr.msk.bf16.vlgmr.msra.gmra.mrb[48].mxu0 %vm186_vm2, %v3827_v54  ;;  %3119 = vmatmul.mubr.msk.bf16.vlgmr.msra.gmra.mrb[44].mxu1 %vm186_vm2, %v3825_v49  ;;  %v1793_v11 = vsel %vm186_vm2, %v1788_v14, 0  ;;  %v1842_v12 = vsel %vm186_vm2, %v1837_v63, 0 }
 0xd9c   :  { %3123 = vmatpush3.bf16.xpose.msra.mxu0 %v1695_v10  ;;  %3129 = vmatpush3.bf16.xpose.msra.mxu1 %v1744_v62 }
 0xd9d   :  { %3124 = vmatprep.mubr.msk.bf16.mxu0 %vm3410_vm1, %v3409_v15  ;;  %3130 = vmatprep.mubr.msk.bf16.mxu1 %vm3410_vm1, %v3409_v15 }
 0xd9e   :  { %3134 = vmatprep.subr.bf16.mxu0 %v3409_v15  ;;  %3140 = vmatprep.subr.bf16.mxu1 %v3409_v15  ;;  %v1981_v13 = vpop.permute.xlu1 %1980 }
 0xd9f   :  { %v1986_v19 = vsel %vm677_vm3, %v1981_v13, 0 }
 0xda3   :  { %3125 = vmatmul.mubr.msk.bf16.vlgmr.msra.gmra.mrb[52].mxu0 %vm186_vm2, %v3836_v0  ;;  %3131 = vmatmul.mubr.msk.bf16.vlgmr.msra.gmra.mrb[48].mxu1 %vm186_vm2, %v3834_v60 }
 0xda4   :  { %3135 = vmatpush3.bf16.xpose.msra.mxu0 %v1793_v11  ;;  %3141 = vmatpush3.bf16.xpose.msra.mxu1 %v1842_v12 }
 0xda5   :  { %3136 = vmatprep.mubr.msk.bf16.mxu0 %vm3410_vm1, %v3409_v15  ;;  %3142 = vmatprep.mubr.msk.bf16.mxu1 %vm3410_vm1, %v3409_v15 }
 0xda6   :  { %3146 = vmatprep.subr.bf16.mxu0 %v3409_v15  ;;  %3152 = vmatprep.subr.bf16.mxu1 %v3409_v15 }
 0xdab   :  { %3137 = vmatmul.mubr.msk.bf16.vlgmr.msra.gmra.mrb[56].mxu0 %vm186_vm2, %v3846_v6  ;;  %3143 = vmatmul.mubr.msk.bf16.vlgmr.msra.gmra.mrb[52].mxu1 %vm186_vm2, %v3844_v5 }
 0xdac   :  { %3147 = vmatpush3.bf16.msra.mxu0 %v1986_v19  ;;  %3154 = vmatprep.mubr.msk.bf16.mxu1 %vm3410_vm1, %v3409_v15 }
 0xdad   :  { %3148 = vmatprep.mubr.msk.bf16.mxu0 %vm3410_vm1, %v3409_v15  ;;  %3158 = vmatprep.subr.bf16.mxu0 %v3409_v15 }
 0xdfc   :  { %v1584_v20 = vpop.f32.mrb[40].mxu1 }
 0xdfd   :  { %v1585_v21 = vadd.f32 %v1584_v20, %v3596_v25  ;;  %v3108_v22 = vpop.f32.mrb[41].mxu1 }
 0xdfe   :  { %v1587_v23 = vpop.f32.mrb[42].mxu1 }
 0xdff   :  { %v3109_v24 = vpop.f32.mrb[43].mxu1  ;;  %v1887_v26 = vsel %vm186_vm2, %v1585_v21, -inf  ;;  %v1535_v29 = vpop.f32.mrb[44].mxu0 }
 0xe00   :  { %1888 = vmax.xlane.f32.xlu0 %v1887_v26  ;;  %v1536_v30 = vadd.f32 %v1535_v29, %v3598_v27  ;;  %v3102_v33 = vpop.f32.mrb[45].mxu0 }
 0xe01   :  { %v1538_v34 = vpop.f32.mrb[46].mxu0 }
 0xe02   :  { %v3103_v35 = vpop.f32.mrb[47].mxu0  ;;  %v1884_v37 = vsel %vm186_vm2, %v1536_v30, -inf }
 0xe03   :  { %1885 = vmax.xlane.f32.xlu1 %v1884_v37 }
 0xe6e   :  { %v1633_v61 = vpop.f32.mrb[48].mxu0  ;;  %v1682_v51 = vpop.f32.mrb[44].mxu1 }
 0xe6f   :  { %v1634_v28 = vadd.f32 %v1633_v61, %v3598_v27  ;;  %v3114_v36 = vpop.f32.mrb[49].mxu0  ;;  %v3120_v16 = vpop.f32.mrb[45].mxu1  ;;  %v1683_v40 = vadd.f32 %v1682_v51, %v3596_v25 }
 0xe70   :  { %v1636_v38 = vpop.f32.mrb[50].mxu0  ;;  %v1685_v39 = vpop.f32.mrb[46].mxu1 }
 0xe71   :  { %v3115_v41 = vpop.f32.mrb[51].mxu0  ;;  %v3121_v43 = vpop.f32.mrb[47].mxu1  ;;  %v1890_v46 = vsel %vm186_vm2, %v1634_v28, -inf  ;;  %v1893_v47 = vsel %vm186_vm2, %v1683_v40, -inf }
 0xe72   :  { %1891 = vmax.xlane.f32.xlu0 %v1890_v46 }
 0xe76   :  { %v1780_v48 = vpop.f32.mrb[48].mxu1  ;;  %1894 = vmax.xlane.f32.xlu0 %v1893_v47  ;;  %v1731_v56 = vpop.f32.mrb[52].mxu0 }
 0xe77   :  { %v3908_v52 = vadd.f32 %v1780_v48, %v3596_v25  ;;  %v1732_v44 = vadd.f32 %v1731_v56, %v3598_v27  ;;  %v3126_v53 = vpop.f32.mrb[53].mxu0  ;;  %v3132_v57 = vpop.f32.mrb[49].mxu1 }
 0xe78   :  { %v1734_v58 = vpop.f32.mrb[54].mxu0  ;;  %v1783_v59 = vpop.f32.mrb[50].mxu1 }
 0xe79   :  { %v3127_v1 = vpop.f32.mrb[55].mxu0  ;;  %v3133_v2 = vpop.f32.mrb[51].mxu1  ;;  %v1899_v3 = vsel %vm186_vm2, %v3908_v52, -inf  ;;  %v1896_v4 = vsel %vm186_vm2, %v1732_v44, -inf }
 0xe7a   :  { %1900 = vmax.xlane.f32.xlu0 %v1899_v3  ;;  %1897 = vmax.xlane.f32.xlu1 %v1896_v4 }
 0xe7e   :  { %v1829_v7 = vpop.f32.mrb[56].mxu0  ;;  %v1878_v8 = vpop.f32.mrb[52].mxu1 }
 0xe7f   :  { %v1830_v9 = vadd.f32 %v1829_v7, %v3598_v27  ;;  %v3916_v31 = vadd.f32 %v1878_v8, %v3596_v25  ;;  %v3138_v32 = vpop.f32.mrb[57].mxu0  ;;  %v3144_v55 = vpop.f32.mrb[53].mxu1 }
 0xe80   :  { %v1832_v10 = vpop.f32.mrb[58].mxu0  ;;  %v1881_v62 = vpop.f32.mrb[54].mxu1 }
 0xe81   :  { %v3139_v14 = vpop.f32.mrb[59].mxu0  ;;  %v3145_v63 = vpop.f32.mrb[55].mxu1  ;;  %v1905_v11 = vsel %vm186_vm2, %v3916_v31, -inf  ;;  %v1902_v12 = vsel %vm186_vm2, %v1830_v9, -inf }
 0xe82   :  { %1906 = vmax.xlane.f32.xlu0 %v1905_v11  ;;  %1903 = vmax.xlane.f32.xlu1 %v1902_v12 }
 0xe8d   :  { %v1889_v25 = vpop.xlane.xlu0 %1888 }
 0xe8e   :  { %v1909_v27 = vsub.f32 %v1585_v21, %v1889_v25 }
 0xe90   :  { %v1886_v13 = vpop.xlane.xlu1 %1885  ;;  %v1918_v19 = vmul.f32 1.442695, %v1909_v27 }
 0xe91   :  { %v1908_v20 = vsub.f32 %v1536_v30, %v1886_v13 }
 0xe92   :  { %3365 = vpow2.f32 %v1918_v19 }
 0xe93   :  { %2076 = vrot.lane.b32.xlu1 %v3827_v54, %s3415_s17  ;;  %v1916_v22 = vmul.f32 1.442695, %v1908_v20 }
 0xe95   :  { %3367 = vpow2.f32 %v1916_v22 }
 0xe97   :  { %2124 = vrot.lane.b32.xlu1 %v3825_v49, %s3415_s17 }
 0xe98   :  { %2028 = vrot.lane.b32.xlu0 %v3819_v45, %s3415_s17 }
 0xe9c   :  { %v3927_v23 = vpop.eup %3365 }
 0xe9d   :  { %v1935_v24 = vsel %vm186_vm2, %v3927_v23, 0.0 }
 0xe9f   :  { %v3931_v54 = vpop.eup %3367 }
 0xea0   :  { %v1932_v49 = vsel %vm186_vm2, %v3931_v54, 0.0 }
 0xeb7   :  { %1936 = vadd.xlane.f32.xlu0 %v1935_v24 }
 0xebb   :  { %1933 = vadd.xlane.f32.xlu1 %v1932_v49 }
 0xecc   :  { %2172 = vrot.lane.b32.xlu1 %v3836_v0, %s3415_s17 }
 0xeff   :  { %v1892_v45 = vpop.xlane.xlu0 %1891 }
 0xf00   :  { %v1910_v21 = vsub.f32 %v1634_v28, %v1892_v45 }
 0xf02   :  { %v1920_v26 = vmul.f32 1.442695, %v1910_v21 }
 0xf03   :  { %v1895_v29 = vpop.xlane.xlu0 %1894 }
 0xf04   :  { %3369 = vpow2.f32 %v1920_v26  ;;  %v1911_v30 = vsub.f32 %v1683_v40, %v1895_v29 }
 0xf06   :  { %v1922_v33 = vmul.f32 1.442695, %v1911_v30 }
 0xf07   :  { %v1898_v34 = vpop.xlane.xlu1 %1897  ;;  %v1901_v61 = vpop.xlane.xlu0 %1900 }
 0xf08   :  { %3371 = vpow2.f32 %v1922_v33  ;;  %v1912_v35 = vsub.f32 %v1732_v44, %v1898_v34  ;;  %v1913_v44 = vsub.f32 %v3908_v52, %v1901_v61 }
 0xf0a   :  { %v1924_v37 = vmul.f32 1.442695, %v1912_v35  ;;  %v1926_v53 = vmul.f32 1.442695, %v1913_v44 }
 0xf0c   :  { %3373 = vpow2.f32 %v1924_v37 }
 0xf0e   :  { %v3937_v51 = vpop.eup %3369 }
 0xf0f   :  { %v1907_v36 = vpop.xlane.xlu0 %1906  ;;  %v1904_v16 = vpop.xlane.xlu1 %1903  ;;  %v1938_v0 = vsel %vm186_vm2, %v3937_v51, 0.0 }
 0xf10   :  { %v1914_v38 = vsub.f32 %v1830_v9, %v1904_v16  ;;  %1939 = vadd.xlane.f32.xlu1 %v1938_v0  ;;  %v1915_v57 = vsub.f32 %v3916_v31, %v1907_v36 }
 0xf12   :  { %v3941_v28 = vpop.eup %3371  ;;  %v1928_v39 = vmul.f32 1.442695, %v1914_v38  ;;  %v1930_v58 = vmul.f32 1.442695, %v1915_v57 }
 0xf13   :  { %v2029_v40 = vpop.permute.xlu0 %2028  ;;  %v1941_v41 = vsel %vm186_vm2, %v3941_v28, 0.0  ;;  %v2077_v59 = vpop.permute.xlu1 %2076 }
 0xf14   :  { %v2034_v43 = vsel %vm677_vm3, %v2029_v40, 0  ;;  %1942 = vadd.xlane.f32.xlu0 %v1941_v41  ;;  %3375 = vpow2.f32 %v1928_v39  ;;  %v2082_v10 = vsel %vm677_vm3, %v2077_v59, 0 }
 0xf15   :  { %3153 = vmatpush3.bf16.msra.mxu1 %v2034_v43  ;;  %3377 = vpow2.f32 %v1926_v53 }
 0xf16   :  { %3164 = vmatprep.subr.bf16.mxu1 %v3409_v15  ;;  %v3947_v46 = vpop.eup %3373  ;;  %3379 = vpow2.f32 %v1930_v58 }
 0xf17   :  { %v1944_v47 = vsel %vm186_vm2, %v3947_v46, 0.0  ;;  %v2125_v1 = vpop.permute.xlu1 %2124 }
 0xf18   :  { %1945 = vadd.xlane.f32.xlu1 %v1944_v47  ;;  %v2130_v31 = vsel %vm677_vm3, %v2125_v1, 0 }
 0xf1e   :  { %v3951_v48 = vpop.eup %3375 }
 0xf1f   :  { %v1950_v56 = vsel %vm186_vm2, %v3951_v48, 0.0  ;;  %v3963_v3 = vpop.eup %3377 }
 0xf20   :  { %1951 = vadd.xlane.f32.xlu1 %v1950_v56  ;;  %v3967_v52 = vpop.eup %3379 }
 0xf2a   :  { %2220 = vrot.lane.b32.xlu0 %v3834_v60, %s3415_s17 }
 0xf31   :  { %2268 = vrot.lane.b32.xlu1 %v3846_v6, %s3415_s17  ;;  %v1947_v6 = vsel %vm186_vm2, %v3963_v3, 0.0 }
 0xf35   :  { %2400 = vrot.lane.b32.xlu1 %v3788_v17, %s3416_s1  ;;  %v1953_v17 = vsel %vm186_vm2, %v3967_v52, 0.0 }
 0xf44   :  { %v1937_v2 = vpop.xlane.xlu0 %1936 }
 0xf45   :  { %3381 = vrcp.f32 %v1937_v2 }
 0xf48   :  { %v1934_v60 = vpop.xlane.xlu1 %1933 }
 0xf49   :  { %3383 = vrcp.f32 %v1934_v60  ;;  %1948 = vadd.xlane.f32.xlu0 %v1947_v6 }
 0xf4c   :  { %v2173_v62 = vpop.permute.xlu1 %2172 }
 0xf4d   :  { %1954 = vadd.xlane.f32.xlu0 %v1953_v17  ;;  %v2178_v19 = vsel %vm677_vm3, %v2173_v62, 0 }
 0xf4f   :  { %v3382_v4 = vpop.eup %3381 }
 0xf50   :  { %v1965_v7 = vmul.f32 %v3382_v4, %v3927_v23 }
 0xf52   :  { %v1973_v8 = vpack.c.bf16 %v1965_v7, %v1965_v7 }
 0xf53   :  { %v3384_v9 = vpop.eup %3383 }
 0xf54   :  { %v1964_v32 = vmul.f32 %v3384_v9, %v3931_v54  ;;  %3155 = vmatmul.mubr.msk.bf16.vlgmr.msra.gmra.mrb[56].mxu1 %vm186_vm2, %v1973_v8 }
 0xf55   :  { %3165 = vmatpush3.bf16.msra.mxu1 %v2130_v31  ;;  %3166 = vmatprep.mubr.msk.bf16.mxu1 %vm3410_vm1, %v3409_v15 }
 0xf56   :  { %v1972_v55 = vpack.c.bf16 %v1964_v32, %v1964_v32  ;;  %3176 = vmatprep.subr.bf16.mxu1 %v3409_v15 }
 0xf58   :  { %3149 = vmatmul.mubr.msk.bf16.vlgmr.msra.gmra.mrb[60].mxu0 %vm186_vm2, %v1972_v55 }
 0xf59   :  { %3159 = vmatpush3.bf16.msra.mxu0 %v2082_v10  ;;  %3160 = vmatprep.mubr.msk.bf16.mxu0 %vm3410_vm1, %v3409_v15 }
 0xf5a   :  { %3170 = vmatprep.subr.bf16.mxu0 %v3409_v15 }
 0xf63   :  { %2316 = vrot.lane.b32.xlu0 %v3844_v5, %s3415_s17 }
 0xf9d   :  { %v1940_v14 = vpop.xlane.xlu1 %1939 }
 0xf9e   :  { %3385 = vrcp.f32 %v1940_v14 }
 0xfa1   :  { %v1943_v63 = vpop.xlane.xlu0 %1942 }
 0xfa2   :  { %3387 = vrcp.f32 %v1943_v63 }
 0xfa5   :  { %v1946_v11 = vpop.xlane.xlu1 %1945  ;;  %v2221_v22 = vpop.permute.xlu0 %2220 }
 0xfa6   :  { %3389 = vrcp.f32 %v1946_v11  ;;  %v2226_v54 = vsel %vm677_vm3, %v2221_v22, 0 }
 0xfa8   :  { %v3386_v12 = vpop.eup %3385 }
 0xfa9   :  { %v1966_v25 = vmul.f32 %v3386_v12, %v3937_v51 }
 0xfab   :  { %v1974_v27 = vpack.c.bf16 %v1966_v25, %v1966_v25 }
 0xfac   :  { %v3388_v13 = vpop.eup %3387 }
 0xfad   :  { %v1967_v20 = vmul.f32 %v3388_v13, %v3941_v28  ;;  %3161 = vmatmul.mubr.msk.bf16.vlgmr.msra.gmra.mrb[64].mxu0 %vm186_vm2, %v1974_v27  ;;  %v1952_v5 = vpop.xlane.xlu1 %1951 }
 0xfae   :  { %3171 = vmatpush3.bf16.msra.mxu0 %v2178_v19  ;;  %3172 = vmatprep.mubr.msk.bf16.mxu0 %vm3410_vm1, %v3409_v15  ;;  %3391 = vrcp.f32 %v1952_v5 }
 0xfaf   :  { %v1975_v23 = vpack.c.bf16 %v1967_v20, %v1967_v20  ;;  %3182 = vmatprep.subr.bf16.mxu0 %v3409_v15 }
 0xfb0   :  { %v3390_v24 = vpop.eup %3389 }
 0xfb1   :  { %3167 = vmatmul.mubr.msk.bf16.vlgmr.msra.gmra.mrb[60].mxu1 %vm186_vm2, %v1975_v23  ;;  %v1968_v49 = vmul.f32 %v3390_v24, %v3947_v46  ;;  %v2269_v45 = vpop.permute.xlu1 %2268 }
 0xfb2   :  { %3177 = vmatpush3.bf16.msra.mxu1 %v2226_v54  ;;  %3178 = vmatprep.mubr.msk.bf16.mxu1 %vm3410_vm1, %v3409_v15  ;;  %v2274_v26 = vsel %vm677_vm3, %v2269_v45, 0 }
 0xfb3   :  { %3188 = vmatprep.subr.bf16.mxu1 %v3409_v15  ;;  %v1976_v21 = vpack.c.bf16 %v1968_v49, %v1968_v49 }
 0xfb5   :  { %3173 = vmatmul.mubr.msk.bf16.vlgmr.msra.gmra.mrb[68].mxu0 %vm186_vm2, %v1976_v21  ;;  %v2401_v44 = vpop.permute.xlu1 %2400 }
 0xfb6   :  { %3183 = vmatpush3.bf16.msra.mxu0 %v2274_v26  ;;  %3184 = vmatprep.mubr.msk.bf16.mxu0 %vm3410_vm1, %v3409_v15 }
 0xfb7   :  { %3194 = vmatprep.subr.bf16.mxu0 %v3409_v15 }
 0xfb8   :  { %v3392_v29 = vpop.eup %3391 }
 0xfb9   :  { %v1970_v30 = vmul.f32 %v3392_v29, %v3951_v48 }
 0xfbb   :  { %v1978_v33 = vpack.c.bf16 %v1970_v30, %v1970_v30 }
 0xfbd   :  { %3185 = vmatmul.mubr.msk.bf16.vlgmr.msra.gmra.mrb[72].mxu0 %vm186_vm2, %v1978_v33 }
 0xfbe   :  { %3198 = vmatprep.mubr.msk.bf16.mxu0 %vm3410_vm1, %v3409_v15  ;;  %3195 = vmatpush3.bf16.msra.mxu0 %v2401_v44 }
 0xfbf   :  { %3196 = vmatprep.subr.bf16.mxu0 %v3409_v15 }
 0xfd6   :  { %v1949_v34 = vpop.xlane.xlu0 %1948 }
 0xfd7   :  { %3393 = vrcp.f32 %v1949_v34 }
 0xfda   :  { %v1955_v35 = vpop.xlane.xlu0 %1954 }
 0xfdb   :  { %3395 = vrcp.f32 %v1955_v35 }
 0xfde   :  { %v2317_v51 = vpop.permute.xlu0 %2316 }
 0xfdf   :  { %v2322_v0 = vsel %vm677_vm3, %v2317_v51, 0 }
 0xfe1   :  { %v3394_v37 = vpop.eup %3393 }
 0xfe2   :  { %v1969_v61 = vmul.f32 %v3394_v37, %v3963_v3  ;;  %v2827_v37 = vld [vmem:[%s4119_s5 + $0xa] ss:$0 sm:$0xff] }
 0xfe4   :  { %v1977_v36 = vpack.c.bf16 %v1969_v61, %v1969_v61 }
 0xfe5   :  { %v3396_v16 = vpop.eup %3395 }
 0xfe6   :  { %3179 = vmatmul.mubr.msk.bf16.vlgmr.msra.gmra.mrb[64].mxu1 %vm186_vm2, %v1977_v36  ;;  %v1971_v38 = vmul.f32 %v3396_v16, %v3967_v52 }
 0xfe7   :  { %3189 = vmatpush3.bf16.msra.mxu1 %v2322_v0  ;;  %3190 = vmatprep.mubr.msk.bf16.mxu1 %vm3410_vm1, %v3409_v15 }
 0xfe8   :  { %3202 = vmatprep.subr.bf16.mxu1 %v3409_v15  ;;  %v1979_v28 = vpack.c.bf16 %v1971_v38, %v1971_v38 }
 0xfee   :  { %3191 = vmatmul.mubr.msk.bf16.vlgmr.msra.gmra.mrb[68].mxu1 %vm186_vm2, %v1979_v28 }
 0xfef   :  { %3206 = vmatprep.mubr.msk.bf16.mxu1 %vm3410_vm1, %v3409_v15 }
0x1027   :  { %v2070_v39 = vpop.f32.mrb[56].mxu1 }
0x1028   :  { %v3156_v40 = vpop.f32.mrb[57].mxu1 }
0x1029   :  { %v2073_v41 = vpop.f32.mrb[58].mxu1 }
0x102a   :  { %v3157_v43 = vpop.f32.mrb[59].mxu1 }
0x102b   :  { %v2022_v46 = vpop.f32.mrb[60].mxu0 }
0x102c   :  { %v3150_v47 = vpop.f32.mrb[61].mxu0 }
0x102d   :  { %v2025_v48 = vpop.f32.mrb[62].mxu0 }
0x102e   :  { %v3151_v56 = vpop.f32.mrb[63].mxu0 }
0x1080   :  { %v2118_v53 = vpop.f32.mrb[64].mxu0 }
0x1081   :  { %v3162_v57 = vpop.f32.mrb[65].mxu0 }
0x1082   :  { %v2121_v58 = vpop.f32.mrb[66].mxu0 }
0x1083   :  { %v3163_v59 = vpop.f32.mrb[67].mxu0 }
0x1084   :  { %v2166_v1 = vpop.f32.mrb[60].mxu1  ;;  %v3312_v59 = vld [vmem:[%s4121_s4 + $0x38] sm:$0xff]  }
0x1085   :  { %v3286_v2 = vpack.i.bf16 %v2166_v1, %v2118_v53  ;;  %v3168_v3 = vpop.f32.mrb[61].mxu1 }
0x1086   :  { %v2169_v60 = vpop.f32.mrb[62].mxu1 }
0x1087   :  { %v3169_v6 = vpop.f32.mrb[63].mxu1  ;;  %3287 = vrot.lane.b32.xlu0 %v3286_v2, %s3417_s22 }
0x1088   :  { %v2214_v52 = vpop.f32.mrb[68].mxu0 }
0x1089   :  { %v3174_v17 = vpop.f32.mrb[69].mxu0 }
0x108a   :  { %v2217_v4 = vpop.f32.mrb[70].mxu0 }
0x108b   :  { %v3175_v7 = vpop.f32.mrb[71].mxu0 }
0x108c   :  { %v2831_v7 = vld [vmem:[%s4119_s5 + $0xb] ss:$0 sm:$0xff] }
0x1090   :  { %v2310_v8 = vpop.f32.mrb[72].mxu0 }
0x1091   :  { %v3186_v9 = vpop.f32.mrb[73].mxu0 }
0x1092   :  { %v2313_v31 = vpop.f32.mrb[74].mxu0 }
0x1093   :  { %v3187_v32 = vpop.f32.mrb[75].mxu0 }
0x1094   :  { %v2832_v32 = vld [vmem:[%s4119_s5 + $0xc] ss:$0 sm:$0xff] }
0x10b9   :  { %v2262_v55 = vpop.f32.mrb[64].mxu1 }
0x10ba   :  { %v3291_v10 = vpack.i.bf16 %v2262_v55, %v2214_v52  ;;  %v3180_v62 = vpop.f32.mrb[65].mxu1 }
0x10bb   :  { %v2265_v14 = vpop.f32.mrb[66].mxu1 }
0x10bc   :  { %v3181_v63 = vpop.f32.mrb[67].mxu1  ;;  %3292 = vrot.lane.b32.xlu1 %v3291_v10, %s3418_s23 }
0x10bd   :  { %v3313_v63 = vld [vmem:[%s4121_s4 + $0x40] sm:$0xff]  }
0x10c0   :  { %2402 = vrot.lane.b32.xlu1 %v3794_v18, %s3416_s1 }
0x10c1   :  { %v2358_v11 = vpop.f32.mrb[68].mxu1 }
0x10c2   :  { %v3296_v12 = vpack.i.bf16 %v2358_v11, %v2310_v8  ;;  %v3192_v25 = vpop.f32.mrb[69].mxu1  ;;  %v3314_v11 = vld [vmem:[%s4121_s4 + $0x48] sm:$0xff]  }
0x10c3   :  { %v2361_v27 = vpop.f32.mrb[70].mxu1  ;;  %v3316_v25 = vld [vmem:[%s4121_s4 + $0x58] sm:$0xff]  }
0x10c4   :  { %v3193_v13 = vpop.f32.mrb[71].mxu1  ;;  %3297 = vrot.lane.b32.xlu0 %v3296_v12, %s3419_s24  ;;  %v3315_v12 = vld [vmem:[%s4121_s4 + $0x50] sm:$0xff]   ;;  %v2846_v27 = vld [vmem:[%s4119_s5 + $0x9] ss:$0 sm:$0xff] }
0x10f9   :  { %v3288_v20 = vpop.permute.xlu0 %3287 }
0x10fa   :  { %v3290_v5 = vunpack.i.h.bf16 %v3288_v20  ;;  %v3289_v23 = vunpack.i.l.bf16 %v3288_v20 }
0x10fc   :  { %v2389_v18 = vsel %vm186_vm2, %v2070_v39, %v3290_v5  ;;  %v2388_v45 = vsel %vm186_vm2, %v2022_v46, %v3289_v23 }
0x112e   :  { %v3293_v19 = vpop.permute.xlu1 %3292 }
0x112f   :  { %v3295_v24 = vunpack.i.h.bf16 %v3293_v19  ;;  %v3294_v54 = vunpack.i.l.bf16 %v3293_v19 }
0x1131   :  { %v2391_v29 = vsel %vm1083_vm4, %v2389_v18, %v3295_v24  ;;  %v2390_v30 = vsel %vm1083_vm4, %v2388_v45, %v3294_v54 }
0x1132   :  { %v2403_v22 = vpop.permute.xlu1 %2402 }
0x1133   :  { %3197 = vmatpush3.bf16.msra.mxu0 %v2403_v22 }
0x1134   :  { %3210 = vmatprep.subr.bf16.mxu0 %v3409_v15 }
0x1136   :  { %v3298_v49 = vpop.permute.xlu0 %3297 }
0x1137   :  { %v3300_v21 = vunpack.i.h.bf16 %v3298_v49  ;;  %v3299_v26 = vunpack.i.l.bf16 %v3298_v49 }
0x1139   :  { %v2393_v33 = vsel %vm1086_vm5, %v2391_v29, %v3300_v21  ;;  %v2392_v34 = vsel %vm1086_vm5, %v2390_v30, %v3299_v26 }
0x113a   :  { %v2394_v35 = vpack.c.bf16 %v2393_v33, %v2392_v34 }
0x113c   :  { %3199 = vmatmul.mubr.msk.bf16.vlgmr.msra.gmra.mrb[76].mxu0 %vm37_vm0, %v2394_v35 }
0x113d   :  { %3218 = vmatprep.mubr.msk.bf16.mxu0 %vm3410_vm1, %v3409_v15  ;;  %3211 = vmatpush3.bf16.msra.mxu0 %v3313_v63 }
0x113e   :  { %3212 = vmatprep.subr.bf16.mxu0 %v3409_v15 }
0x1141   :  { %3213 = vmatpush3.bf16.msra.mxu0 %v3314_v11  ;;  %v2859_v11 = vld [vmem:[%s4119_s5 + $0xe] ss:$0 sm:$0xff] }
0x1142   :  { %3214 = vmatprep.subr.bf16.mxu0 %v3409_v15 }
0x1145   :  { %3215 = vmatpush3.bf16.msra.mxu0 %v3315_v12 }
0x1146   :  { %3216 = vmatprep.subr.bf16.mxu0 %v3409_v15 }
0x1149   :  { %3217 = vmatpush3.bf16.msra.mxu0 %v3316_v25 }
0x120f   :  { %v2443_v61 = vpop.f32.mrb[76].mxu0 }
0x1210   :  { %v2444_v51 = vadd.f32 %v2827_v37, %v2443_v61  ;;  %v3200_v36 = vpop.f32.mrb[77].mxu0 }
0x1211   :  { %v2446_v16 = vpop.f32.mrb[78].mxu0 }
0x1212   :  { %v2447_v0 = vadd.f32 %v2827_v37, %v2446_v16  ;;  %v3201_v38 = vpop.f32.mrb[79].mxu0  ;;  %v2450_v28 = vadd.f32 %v2444_v51, %v3805_v50 }
0x1214   :  { %v2454_v39 = vsel %vm37_vm0, %v2450_v28, 0.0  ;;  %v2451_v40 = vadd.f32 %v2447_v0, %v3807_v42  ;;  %v3311_v42 = vld [vmem:[%s4121_s4 + $0x30] sm:$0xff]  }
0x1215   :  { %2455 = vadd.xlane.f32.xlu0 %v2454_v39  ;;  %3203 = vmatpush3.bf16.msra.mxu1 %v3311_v42 }
0x1216   :  { %v2457_v41 = vsel %vm37_vm0, %v2451_v40, 0.0  ;;  %3204 = vmatprep.subr.bf16.mxu1 %v3409_v15 }
0x1217   :  { %2458 = vadd.xlane.f32.xlu1 %v2457_v41 }
0x1219   :  { %3205 = vmatpush3.bf16.msra.mxu1 %v3312_v59 }
0x121a   :  { %3222 = vmatprep.subr.bf16.mxu1 %v3409_v15 }
0x12a2   :  { %v2456_v43 = vpop.xlane.xlu0 %2455 }
0x12a3   :  { %v2460_v46 = vmul.f32 0.03125, %v2456_v43 }
0x12a4   :  { %v2459_v47 = vpop.xlane.xlu1 %2458 }
0x12a5   :  { %v2462_v48 = vsub.f32 %v2450_v28, %v2460_v46  ;;  %v2461_v56 = vmul.f32 0.03125, %v2459_v47  ;;  %v2851_v28 = vld [vmem:[%s4119_s5 + $0xd] ss:$0 sm:$0xff] }
0x12a7   :  { %v2463_v44 = vsub.f32 %v2451_v40, %v2461_v56  ;;  %v2464_v53 = vmul.f32 %v2462_v48, %v2462_v48 }
0x12a9   :  { %v2466_v57 = vsel %vm37_vm0, %v2464_v53, 0.0  ;;  %v2465_v58 = vmul.f32 %v2463_v44, %v2463_v44 }
0x12aa   :  { %2467 = vadd.xlane.f32.xlu0 %v2466_v57 }
0x12ab   :  { %v2469_v50 = vsel %vm37_vm0, %v2465_v58, 0.0 }
0x12ae   :  { %2470 = vadd.xlane.f32.xlu0 %v2469_v50 }
0x1337   :  { %v2468_v1 = vpop.xlane.xlu0 %2467 }
0x1338   :  { %v2472_v2 = vmul.f32 0.03125, %v2468_v1 }
0x133a   :  { %v2474_v3 = vadd.f32 1e-12, %v2472_v2 }
0x133b   :  { %v2471_v60 = vpop.xlane.xlu0 %2470 }
0x133c   :  { %3397 = vrsqrt.f32 %v2474_v3  ;;  %v2473_v6 = vmul.f32 0.03125, %v2471_v60 }
0x133e   :  { %v2475_v52 = vadd.f32 1e-12, %v2473_v6 }
0x1340   :  { %3399 = vrsqrt.f32 %v2475_v52  ;;  %v2702_v52 = vld [vmem:[%s4122_s6] sm:$0xff] }
0x1346   :  { %v3398_v17 = vpop.eup %3397 }
0x1347   :  { %v2478_v4 = vmul.f32 %v3398_v17, %v2462_v48  ;;  %v2703_v17 = vld [vmem:[%s4122_s6 + $0x8] sm:$0xff] }
0x1349   :  { %v2484_v9 = vmul.f32 %v2831_v7, %v2478_v4  ;;  %v2706_v4 = vpack.c.bf16 %v2703_v17, %v2702_v52 }
0x134a   :  { %v3400_v8 = vpop.eup %3399 }
0x134b   :  { %v2479_v31 = vmul.f32 %v3400_v8, %v2463_v44  ;;  %v2490_v10 = vadd.f32 %v2832_v32, %v2484_v9  ;;  %v2705_v8 = vld [vmem:[%s4122_s6 + $0x18] sm:$0xff] }
0x134d   :  { %v2485_v55 = vmul.f32 %v2831_v7, %v2479_v31  ;;  %v2704_v7 = vld [vmem:[%s4122_s6 + $0x10] sm:$0xff] }
0x134e   :  { %v2707_v9 = vpack.c.bf16 %v2705_v8, %v2704_v7 }
0x134f   :  { %v2491_v62 = vadd.f32 %v2832_v32, %v2485_v55 }
0x1351   :  { %v2505_v14 = vpack.c.bf16 %v2491_v62, %v2490_v10 }
0x1353   :  { %3207 = vmatmul.mubr.msk.bf16.vlgmr.msra.gmra.mrb[72].mxu1 %vm37_vm0, %v2505_v14 }
0x1354   :  { %3226 = vmatprep.mubr.msk.bf16.mxu1 %vm3410_vm1, %v3409_v15  ;;  %3223 = vmatpush3.bf16.msra.mxu1 %v2706_v4 }
0x1355   :  { %3224 = vmatprep.subr.bf16.mxu1 %v3409_v15  ;;  %v2860_v15 = vld [vmem:[%s4119_s5 + $0xf] ss:$0 sm:$0xff] }
0x1358   :  { %3225 = vmatpush3.bf16.msra.mxu1 %v2707_v9 }
0x1426   :  { %v2560_v13 = vpop.f32.mrb[72].mxu1 }
0x1427   :  { %v2561_v19 = vadd.f32 %v2846_v27, %v2560_v13  ;;  %v3208_v20 = vpop.f32.mrb[73].mxu1 }
0x1428   :  { %v2563_v22 = vpop.f32.mrb[74].mxu1 }
0x1429   :  { %v2567_v5 = vmul.f32 %v2561_v19, %v2561_v19  ;;  %v2564_v23 = vadd.f32 %v2846_v27, %v2563_v22  ;;  %v3209_v24 = vpop.f32.mrb[75].mxu1 }
0x142b   :  { %v2569_v54 = vmul.f32 %v2567_v5, %v2561_v19  ;;  %v2568_v49 = vmul.f32 %v2564_v23, %v2564_v23 }
0x142d   :  { %v2571_v18 = vmul.f32 0.044715, %v2569_v54  ;;  %v2570_v45 = vmul.f32 %v2568_v49, %v2564_v23 }
0x142f   :  { %v2573_v21 = vadd.f32 %v2571_v18, %v2561_v19  ;;  %v2572_v26 = vmul.f32 0.044715, %v2570_v45 }
0x1431   :  { %v2575_v29 = vmul.f32 0.7978846, %v2573_v21  ;;  %v2574_v30 = vadd.f32 %v2572_v26, %v2564_v23 }
0x1433   :  { %3401 = vtanh.f32 %v2575_v29  ;;  %v2576_v33 = vmul.f32 0.7978846, %v2574_v30 }
0x1435   :  { %3403 = vtanh.f32 %v2576_v33 }
0x143d   :  { %v3402_v34 = vpop.eup %3401 }
0x143e   :  { %v2579_v35 = vadd.f32 1.0, %v3402_v34 }
0x143f   :  { %v3404_v37 = vpop.eup %3403 }
0x1440   :  { %v2581_v61 = vmul.f32 0.5, %v2579_v35  ;;  %v2580_v51 = vadd.f32 1.0, %v3404_v37 }
0x1442   :  { %v2582_v36 = vmul.f32 0.5, %v2580_v51  ;;  %v2583_v16 = vmul.f32 %v2581_v61, %v2561_v19 }
0x1444   :  { %v2584_v0 = vmul.f32 %v2582_v36, %v2564_v23  ;;  %v2861_v23 = vld [vmem:[%s4122_s6 + $0x20] ss:$0 sm:$0xff] }
0x1446   :  { %v2585_v38 = vpack.c.bf16 %v2584_v0, %v2583_v16 }
0x1448   :  { %3219 = vmatmul.mubr.msk.bf16.vlgmr.msra.gmra.mrb[80].mxu0 %vm1309_vm6, %v2585_v38 }
0x151b   :  { %v2652_v39 = vpop.f32.mrb[80].mxu0 }
0x151c   :  { %v2653_v40 = vadd.f32 %v2851_v28, %v2652_v39  ;;  %v3220_v41 = vpop.f32.mrb[81].mxu0 }
0x151d   :  { %v2655_v43 = vpop.f32.mrb[82].mxu0 }
0x151e   :  { %v2656_v46 = vadd.f32 %v2851_v28, %v2655_v43  ;;  %v3221_v47 = vpop.f32.mrb[83].mxu0  ;;  %v2659_v48 = vadd.f32 %v2653_v40, %v2490_v10 }
0x1520   :  { %v2663_v56 = vsel %vm37_vm0, %v2659_v48, 0.0  ;;  %v2660_v44 = vadd.f32 %v2656_v46, %v2491_v62 }
0x1521   :  { %2664 = vadd.xlane.f32.xlu0 %v2663_v56 }
0x1522   :  { %v2666_v53 = vsel %vm37_vm0, %v2660_v44, 0.0 }
0x1523   :  { %2667 = vadd.xlane.f32.xlu1 %v2666_v53 }
0x15ae   :  { %v2665_v57 = vpop.xlane.xlu0 %2664 }
0x15af   :  { %v2669_v58 = vmul.f32 0.03125, %v2665_v57 }
0x15b0   :  { %v2668_v50 = vpop.xlane.xlu1 %2667 }
0x15b1   :  { %v2671_v42 = vsub.f32 %v2659_v48, %v2669_v58  ;;  %v2670_v59 = vmul.f32 0.03125, %v2668_v50 }
0x15b3   :  { %v2672_v1 = vsub.f32 %v2660_v44, %v2670_v59  ;;  %v2673_v2 = vmul.f32 %v2671_v42, %v2671_v42 }
0x15b5   :  { %v2675_v3 = vsel %vm37_vm0, %v2673_v2, 0.0  ;;  %v2674_v60 = vmul.f32 %v2672_v1, %v2672_v1 }
0x15b6   :  { %2676 = vadd.xlane.f32.xlu0 %v2675_v3 }
0x15b7   :  { %v2678_v6 = vsel %vm37_vm0, %v2674_v60, 0.0 }
0x15b8   :  { %2679 = vadd.xlane.f32.xlu1 %v2678_v6 }
0x1643   :  { %v2677_v31 = vpop.xlane.xlu0 %2676 }
0x1644   :  { %v2681_v32 = vmul.f32 0.03125, %v2677_v31 }
0x1645   :  { %v2680_v55 = vpop.xlane.xlu1 %2679 }
0x1646   :  { %v2683_v10 = vadd.f32 1e-12, %v2681_v32  ;;  %v2682_v62 = vmul.f32 0.03125, %v2680_v55 }
0x1648   :  { %3405 = vrsqrt.f32 %v2683_v10  ;;  %v2684_v14 = vadd.f32 1e-12, %v2682_v62 }
0x164a   :  { %3407 = vrsqrt.f32 %v2684_v14 }
0x1652   :  { %v3406_v63 = vpop.eup %3405 }
0x1653   :  { %v2687_v12 = vmul.f32 %v3406_v63, %v2671_v42 }
0x1654   :  { %v3408_v25 = vpop.eup %3407 }
0x1655   :  { %v2693_v27 = vmul.f32 %v2859_v11, %v2687_v12  ;;  %v2688_v13 = vmul.f32 %v3408_v25, %v2672_v1 }
0x1657   :  { %v2694_v19 = vmul.f32 %v2859_v11, %v2688_v13  ;;  %v2699_v20 = vadd.f32 %v2860_v15, %v2693_v27 }
0x1659   :  { %v2700_v22 = vadd.f32 %v2860_v15, %v2694_v19 }
0x165b   :  { %v2701_v5 = vpack.c.bf16 %v2700_v22, %v2699_v20 }
0x165d   :  { %3227 = vmatmul.mubr.msk.bf16.vlgmr.msra.gmra.mrb[76].mxu1 %vm37_vm0, %v2701_v5 }
0x1730   :  { %v2750_v24 = vpop.f32.mrb[76].mxu1 }
0x1731   :  { %v2751_v54 = vadd.f32 %v2861_v23, %v2750_v24  ;;  %v3228_v49 = vpop.f32.mrb[77].mxu1 }
0x1732   :  { %v2753_v18 = vpop.f32.mrb[78].mxu1 }
0x1733   :  { %2757 = vst.msk [vmem:[%s4123_s7] sm:$0xff] %vm1083_vm4, %v2751_v54  ;;  %v2754_v45 = vadd.f32 %v2861_v23, %v2753_v18  ;;  %v3229_v21 = vpop.f32.mrb[79].mxu1 }
0x1735   :  { %2758 = vst.msk [vmem:[%s4123_s7 + $0x8] sm:$0xff] %vm1083_vm4, %v2754_v45 }

</bundles_post_ra>
